<compile_context>
chip_gen: v6e
topology: v6e:2x2x1
jax: 0.10.0
libtpu: 0.0.40
codegen_flags: <defaults>
</compile_context>

<pallas_src>
import functools

import jax
import jax.numpy as jnp
import numpy as np
from jax.experimental import pallas as pl
from jax.experimental.pallas import tpu as pltpu


def _proj_head_kernel(x_ref, pool_ref, wf_ref, bf_ref, o_ref):
    # x_ref:    (bb, C, H*W)   channel-major input block (NCHW, spatial flattened)
    # pool_ref: (H*W, S*S)     average-pool matrix (grid-invariant, resident)
    # wf_ref:   (P, C)         fused (conv1 @ conv2) weight, transposed
    # bf_ref:   (P, 1)         fused bias (f32), broadcast along lanes
    # o_ref:    (bb, P, S*S)   channel-major output block (lane axis = S*S)
    pool = pool_ref[...]
    wf = wf_ref[...]
    bias = bf_ref[...]
    for i in range(x_ref.shape[0]):            # small static unroll over batch block
        # Pool folded into an MXU matmul: (C, H*W) @ (H*W, S*S) -> (C, S*S)
        xp = jnp.dot(x_ref[i], pool, preferred_element_type=jnp.float32)
        # Fused 1x1 convs: (P, C) @ (C, S*S) -> (P, S*S), f32 accumulation
        y = jnp.dot(wf, xp.astype(wf.dtype),
                    preferred_element_type=jnp.float32) + bias
        o_ref[i] = y.astype(o_ref.dtype)


def prepare_convmlp_params(w1, b1, w2, b2, H, W, pool_size, dtype):
    """One-time prep (hoisted out of the forward): fuse the affine 1x1 convs and
    build the average-pooling matrix.  Returns (pool_mat, wf_t, bf_col)."""
    S = pool_size
    # TODO(synk): AdaptiveAvgPool2d with non-divisible H/W (variable-size windows)
    # is not implemented; the divisible case matches PyTorch exactly.
    assert H % S == 0 and W % S == 0, "adaptive pool implemented for divisible spatial dims"
    kh, kw = H // S, W // S
    P = w2.shape[1]

    # Affine fusion (the reference module has NO nonlinearity between the convs).
    wf = jnp.asarray(w1, jnp.float32) @ jnp.asarray(w2, jnp.float32)          # (C, P)
    bf = jnp.asarray(b1, jnp.float32) @ jnp.asarray(w2, jnp.float32) \
        + jnp.asarray(b2, jnp.float32)                                        # (P,)
    wf_t = wf.T.astype(dtype)                                                 # (P, C)
    bf_col = bf.reshape(P, 1).astype(jnp.float32)                             # (P, 1)

    # Average pool as an (H*W, S*S) matmul operand (runs on the MXU in-kernel).
    # NOTE: for very large H*W a separable (W->S then H->S) pooling would be
    # preferable; at head-sized shapes this single matrix is simplest/fastest.
    hw, ss = H * W, S * S
    rows = np.arange(hw)
    cols = (rows // W // kh) * S + (rows % W) // kw
    pm = np.zeros((hw, ss), np.float32)
    pm[rows, cols] = 1.0 / (kh * kw)
    pool_mat = jnp.asarray(pm, dtype)                                         # (H*W, S*S)
    return pool_mat, wf_t, bf_col


def _tpu_vmem_capacity_bytes():
    try:
        return int(pltpu.get_tpu_info().vmem_capacity_bytes)
    except Exception:
        return 64 << 20  # conservative (v7x-sized) fallback


def _num_tensorcores_per_chip():
    try:
        if "v7" in jax.devices()[0].device_kind.lower():
            return 2
    except Exception:
        pass
    return 1  # v5e / v6e: single TensorCore per chip


@functools.partial(jax.jit, static_argnames=("pool_size",))
def projection_head_convmlp(x_nchw, pool_mat, wf_t, bf_col, *, pool_size=16):
    """x_nchw: (B, C, H, W); returns (B, P, pool_size, pool_size)."""
    B, C, H, W = x_nchw.shape
    S = pool_size
    HW, SS = H * W, S * S
    P = wf_t.shape[0]
    dt = x_nchw.dtype
    itemsize = jnp.dtype(dt).itemsize

    # Channel-major end-to-end: collapsing the trailing spatial dims is a free
    # row-major reshape -> no HBM transpose of x or y is ever materialized.
    x3 = x_nchw.reshape(B, C, HW)

    # ---- generation-aware tiling over the batch axis ----
    vmem_cap = _tpu_vmem_capacity_bytes()
    n_cores = _num_tensorcores_per_chip()
    tile_cap = (4 << 20) if vmem_cap <= (64 << 20) else (12 << 20)  # v7x vs v5e/v6e
    per_item = C * HW * itemsize
    bb = max(1, min(B, 16, tile_cap // max(per_item, 1)))
    # Only force extra grid steps on multi-TensorCore chips (v7x): >=2 steps per
    # core so the input DMA overlaps compute.  Single-TC chips take one big tile.
    min_steps = 2 * n_cores if n_cores > 1 else 1
    while bb > 1 and pl.cdiv(B, bb) < min_steps:
        bb -= 1
    steps = pl.cdiv(B, bb)
    Bp = steps * bb
    if Bp > B:
        x3 = jnp.pad(x3, ((0, Bp - B), (0, 0), (0, 0)))

    # VMEM budget: double-buffered x/out tiles, resident pool/weight/bias blocks
    # (counted twice in case constant-index blocks are double-buffered), plus the
    # f32 intermediates the kernel materializes, plus headroom.
    needed = (2 * bb * (C * HW + P * SS) * itemsize
              + 2 * (HW * SS + P * C) * itemsize + 2 * P * 4
              + bb * (C * SS + P * SS) * 4)
    vmem_bytes = int(min(max(2 * needed + (4 << 20), 16 << 20), vmem_cap * 3 // 4))

    out = pl.pallas_call(
        _proj_head_kernel,
        out_shape=jax.ShapeDtypeStruct((Bp, P, SS), dt),
        grid_spec=pltpu.PrefetchScalarGridSpec(
            num_scalar_prefetch=0,
            grid=(steps,),
            in_specs=[
                pl.BlockSpec((bb, C, HW), lambda i: (i, 0, 0)),
                # Constant index maps -> pool matrix / weights / bias stay resident.
                pl.BlockSpec((HW, SS), lambda i: (0, 0)),
                pl.BlockSpec((P, C), lambda i: (0, 0)),
                pl.BlockSpec((P, 1), lambda i: (0, 0)),
            ],
            out_specs=pl.BlockSpec((bb, P, SS), lambda i: (i, 0, 0)),
        ),
        compiler_params=pltpu.CompilerParams(
            dimension_semantics=("parallel",),
            vmem_limit_bytes=vmem_bytes),
    )(x3, pool_mat, wf_t, bf_col)

    # Free reshape back to NCHW: (B, P, S*S) -> (B, P, S, S).
    return out[:B].reshape(B, P, S, S)


def _reference(x_nchw, w1, b1, w2, b2, pool_size):
    B, C, H, W = x_nchw.shape
    S = pool_size
    kh, kw = H // S, W // S
    xp = x_nchw.reshape(B, C, S, kh, S, kw).mean(axis=(3, 5))           # adaptive avg pool
    h = jnp.einsum("bchw,cd->bdhw", xp, w1) + b1[None, :, None, None]   # 1x1 conv
    y = jnp.einsum("bchw,cd->bdhw", h, w2) + b2[None, :, None, None]    # 1x1 conv
    return y


if __name__ == "__main__":
    key = jax.random.PRNGKey(0)
    dim_in, proj_dim, pool_size = 4, 4, 16
    B, H, W = 2, 32, 32                      # adaptive pool 32x32 -> 16x16 (2x2 windows)

    k_x, k_w1, k_b1, k_w2, k_b2 = jax.random.split(key, 5)
    x = jax.random.normal(k_x, (B, dim_in, H, W), jnp.float32)

    # Conv2d 1x1 weights stored as (C_in, C_out) matrices.
    w1 = jax.random.normal(k_w1, (dim_in, dim_in * 2), jnp.float32) * 0.1
    b1 = jax.random.normal(k_b1, (dim_in * 2,), jnp.float32) * 0.1
    w2 = jax.random.normal(k_w2, (dim_in * 2, proj_dim), jnp.float32) * 0.1
    b2 = jax.random.normal(k_b2, (proj_dim,), jnp.float32) * 0.1

    # One-time weight prep (fusion + pooling matrix), hoisted out of the forward.
    pool_mat, wf_t, bf_col = prepare_convmlp_params(
        w1, b1, w2, b2, H, W, pool_size, x.dtype)

    out = projection_head_convmlp(x, pool_mat, wf_t, bf_col, pool_size=pool_size)
    out = jax.block_until_ready(out)

    ref = _reference(x, w1, b1, w2, b2, pool_size)
    assert out.shape == (B, proj_dim, pool_size, pool_size), out.shape
    np.testing.assert_allclose(np.asarray(out), np.asarray(ref), rtol=2e-5, atol=2e-5)

    print("KERNEL_OK")
</pallas_src>

<mosaic_0001>
module attributes {stable_mosaic.version = 11 : i64} {
  func.func @_proj_head_kernel(%arg0: i32, %arg1: memref<2x4x1024xf32, #tpu.memory_space<vmem>>, %arg2: memref<1024x256xf32, #tpu.memory_space<vmem>>, %arg3: memref<4x4xf32, #tpu.memory_space<vmem>>, %arg4: memref<4x1xf32, #tpu.memory_space<vmem>>, %arg5: memref<2x4x256xf32, #tpu.memory_space<vmem>>) attributes {dimension_semantics = [#tpu.dimension_semantics<parallel>], iteration_bounds = array<i64: 1>, scalar_prefetch = 0 : i64, scratch_operands = 0 : i64, tpu.core_type = #tpu.core_type<tc>, window_params = [{transform_indices = @transform_0, window_bounds = array<i64: 2, 4, 1024>}, {pipeline_mode = #tpu.pipeline_mode<synchronous>, transform_indices = @transform_1, window_bounds = array<i64: 1024, 256>}, {pipeline_mode = #tpu.pipeline_mode<synchronous>, transform_indices = @transform_2, window_bounds = array<i64: 4, 4>}, {pipeline_mode = #tpu.pipeline_mode<synchronous>, transform_indices = @transform_3, window_bounds = array<i64: 4, 1>}, {transform_indices = @transform_4, window_bounds = array<i64: 2, 4, 256>}]} {
    %c0 = arith.constant 0 : index
    %c0_0 = arith.constant 0 : index
    %0 = vector.load %arg2[%c0, %c0_0] : memref<1024x256xf32, #tpu.memory_space<vmem>>, vector<1024x256xf32>
    %c0_1 = arith.constant 0 : index
    %c0_2 = arith.constant 0 : index
    %1 = vector.load %arg3[%c0_1, %c0_2] : memref<4x4xf32, #tpu.memory_space<vmem>>, vector<4x4xf32>
    %c0_3 = arith.constant 0 : index
    %c0_4 = arith.constant 0 : index
    %2 = vector.load %arg4[%c0_3, %c0_4] : memref<4x1xf32, #tpu.memory_space<vmem>>, vector<4x1xf32>
    %c0_5 = arith.constant 0 : index
    %c0_6 = arith.constant 0 : index
    %c0_7 = arith.constant 0 : index
    %3 = vector.load %arg1[%c0_5, %c0_6, %c0_7] : memref<2x4x1024xf32, #tpu.memory_space<vmem>>, vector<1x4x1024xf32>
    %4 = vector.shape_cast %3 : vector<1x4x1024xf32> to vector<4x1024xf32>
    %cst = arith.constant dense<0.000000e+00> : vector<4x256xf32>
    %5 = tpu.matmul %4, %0, %cst {dimension_numbers = #tpu.dot_dimension_numbers<[1], [0], [0], [1], [0, 0, 1, 1], [], []>} : vector<4x1024xf32>, vector<1024x256xf32>, vector<4x256xf32> -> vector<4x256xf32>
    %cst_8 = arith.constant dense<0.000000e+00> : vector<4x256xf32>
    %6 = tpu.matmul %1, %5, %cst_8 {dimension_numbers = #tpu.dot_dimension_numbers<[1], [0], [0], [1], [0, 0, 1, 1], [], []>} : vector<4x4xf32>, vector<4x256xf32>, vector<4x256xf32> -> vector<4x256xf32>
    %7 = vector.broadcast %2 : vector<4x1xf32> to vector<4x256xf32>
    %8 = arith.addf %6, %7 : vector<4x256xf32>
    %c0_9 = arith.constant 0 : index
    %c0_10 = arith.constant 0 : index
    %c0_11 = arith.constant 0 : index
    %9 = vector.load %arg5[%c0_9, %c0_10, %c0_11] : memref<2x4x256xf32, #tpu.memory_space<vmem>>, vector<1x4x256xf32>
    %10 = vector.shape_cast %9 : vector<1x4x256xf32> to vector<4x256xf32>
    %11 = vector.shape_cast %8 : vector<4x256xf32> to vector<1x4x256xf32>
    tpu.vector_store %arg5[%c0_9, %c0_10, %c0_11], %11 {strides = array<i32>} : memref<2x4x256xf32, #tpu.memory_space<vmem>>, vector<1x4x256xf32>,
    %c1 = arith.constant 1 : index
    %c0_12 = arith.constant 0 : index
    %c0_13 = arith.constant 0 : index
    %12 = vector.load %arg1[%c1, %c0_12, %c0_13] : memref<2x4x1024xf32, #tpu.memory_space<vmem>>, vector<1x4x1024xf32>
    %13 = vector.shape_cast %12 : vector<1x4x1024xf32> to vector<4x1024xf32>
    %cst_14 = arith.constant dense<0.000000e+00> : vector<4x256xf32>
    %14 = tpu.matmul %13, %0, %cst_14 {dimension_numbers = #tpu.dot_dimension_numbers<[1], [0], [0], [1], [0, 0, 1, 1], [], []>} : vector<4x1024xf32>, vector<1024x256xf32>, vector<4x256xf32> -> vector<4x256xf32>
    %cst_15 = arith.constant dense<0.000000e+00> : vector<4x256xf32>
    %15 = tpu.matmul %1, %14, %cst_15 {dimension_numbers = #tpu.dot_dimension_numbers<[1], [0], [0], [1], [0, 0, 1, 1], [], []>} : vector<4x4xf32>, vector<4x256xf32>, vector<4x256xf32> -> vector<4x256xf32>
    %16 = vector.broadcast %2 : vector<4x1xf32> to vector<4x256xf32>
    %17 = arith.addf %15, %16 : vector<4x256xf32>
    %c1_16 = arith.constant 1 : index
    %c0_17 = arith.constant 0 : index
    %c0_18 = arith.constant 0 : index
    %18 = vector.load %arg5[%c1_16, %c0_17, %c0_18] : memref<2x4x256xf32, #tpu.memory_space<vmem>>, vector<1x4x256xf32>
    %19 = vector.shape_cast %18 : vector<1x4x256xf32> to vector<4x256xf32>
    %20 = vector.shape_cast %17 : vector<4x256xf32> to vector<1x4x256xf32>
    tpu.vector_store %arg5[%c1_16, %c0_17, %c0_18], %20 {strides = array<i32>} : memref<2x4x256xf32, #tpu.memory_space<vmem>>, vector<1x4x256xf32>,
    return
  }
  func.func @transform_0(%arg0: i32) -> (i32, i32, i32) {
    %c0_i32 = arith.constant 0 : i32
    %c0_i32_0 = arith.constant 0 : i32
    %c0_i32_1 = arith.constant 0 : i32
    return %arg0, %c0_i32, %c0_i32_0 : i32, i32, i32
  }
  func.func @transform_1(%arg0: i32) -> (i32, i32) {
    %c0_i32 = arith.constant 0 : i32
    %c0_i32_0 = arith.constant 0 : i32
    %c0_i32_1 = arith.constant 0 : i32
    return %c0_i32, %c0_i32_0 : i32, i32
  }
  func.func @transform_2(%arg0: i32) -> (i32, i32) {
    %c0_i32 = arith.constant 0 : i32
    %c0_i32_0 = arith.constant 0 : i32
    %c0_i32_1 = arith.constant 0 : i32
    return %c0_i32, %c0_i32_0 : i32, i32
  }
  func.func @transform_3(%arg0: i32) -> (i32, i32) {
    %c0_i32 = arith.constant 0 : i32
    %c0_i32_0 = arith.constant 0 : i32
    %c0_i32_1 = arith.constant 0 : i32
    return %c0_i32, %c0_i32_0 : i32, i32
  }
  func.func @transform_4(%arg0: i32) -> (i32, i32, i32) {
    %c0_i32 = arith.constant 0 : i32
    %c0_i32_0 = arith.constant 0 : i32
    %c0_i32_1 = arith.constant 0 : i32
    return %arg0, %c0_i32, %c0_i32_0 : i32, i32, i32
  }
}

</mosaic_0001>

<bundles_post_ra>
// kernel: projection_head_convmlp.1
= control target key start
LH: loop header
LB: loop body
LE: loop exit
PB: predicated region body
PF: predicated region fallthrough
CT: control target
= control target key end

     0   :  { %9 = vsyncpa [#allocation3], 0  ;;  %s1186_s15 = smov [#allocation2]   ;;  %s2025_s0 = inlined_call_operand.vmem [shape: f32[2,4,1024], index: 0, kind: input, shape index: {}]   ;;  %s2026_s1 = inlined_call_operand.hbm [shape: f32[1024,256], index: 1, kind: input, shape index: {}]   ;;  %s2027_s2 = inlined_call_operand.vmem [shape: f32[4,4], index: 2, kind: input, shape index: {}]   ;;  %s2028_s3 = inlined_call_operand.vmem [shape: f32[4,1], index: 3, kind: input, shape index: {}]   ;;  %s2029_s4 = inlined_call_operand.vmem [shape: f32[2,4,256], index: 4, kind: output, shape index: {}]  }
   0x1   :  { %s17_s16 = sshll.u32 %s1186_s15, 4  ;;  %s18_s16 = int_to_ptr.vmem [resolvable:$true] %s17_s16 }
   0x2   :  { %s1172_s17 = scalar_lea.vmem %s18_s16, 32768  ;;  %p1177_p1 = scmp.lt.s32.totalorder %s18_s16, %s18_s16 }
   0x3   :  { %p1173_p0 = scmp.ne.s32.totalorder %s18_s16, %s1172_s17  ;;  %p1178_p2 = scmp.lt.s32.totalorder %s1172_s17, %s1172_s17 }
   0x5   :  { %p1179_p3 = por %p1178_p2, %p1177_p1 }
   0x7   :  { %p1180_p4 = pnand %p1179_p3, %p1173_p0 }
   0x9   :  { %1183 = shalt.err (!%p1180_p4)
}
   0xa   :  { %s1187_s18 = smov 256   ;;  %s1188_s19 = smov 16  }
   0xb   :  { %23 = dma.hbm_to_vmem [thread:$0]  %s2026_s1, 32768, %s18_s16, [#allocation3], %s1187_s18, %s1187_s18, %s1188_s19  }
   0xc   :  { %1184 = dma.done.wait [#allocation3], 32768  }
   0xd   :  { %1185 = vsyncadd [#allocation3], 4294934528  ;;  %v62_v0 = vld [vmem:[#allocation2 + $0xf8] sm:$0xff]  ;;  %v61_v2 = vld [vmem:[#allocation2 + $0xf0] sm:$0xff]  ;;  %vm598_vm0 = vcmask 1043456   ;;  %vm594_vm1 = vcmask 31744  }
   0xe   :  { %v126_v1 = vld [vmem:[#allocation2 + $0x2f8] sm:$0xff]  ;;  %305 = vmatprep.subr.mxu0 %v62_v0  ;;  %v125_v3 = vld [vmem:[#allocation2 + $0x2f0] sm:$0xff]  ;;  %v60_v4 = vld [vmem:[#allocation2 + $0xe8] sm:$0xff] }
   0xf   :  { %376 = vmatprep.subr.mxu1 %v126_v1  ;;  %v124_v5 = vld [vmem:[#allocation2 + $0x2e8] sm:$0xff]  ;;  %306 = vmatpush1.msra.mxu0 %v61_v2  ;;  %v59_v6 = vld [vmem:[#allocation2 + $0xe0] sm:$0xff]  ;;  %v58_v8 = vld [vmem:[#allocation2 + $0xd8] sm:$0xff] }
  0x10   :  { %377 = vmatpush1.msra.mxu1 %v125_v3  ;;  %v123_v7 = vld [vmem:[#allocation2 + $0x2e0] sm:$0xff]  ;;  %307 = vmatprep.subr.mxu0 %v60_v4  ;;  %v122_v9 = vld [vmem:[#allocation2 + $0x2d8] sm:$0xff]  ;;  %v57_v10 = vld [vmem:[#allocation2 + $0xd0] sm:$0xff] }
  0x11   :  { %378 = vmatprep.subr.mxu1 %v124_v5  ;;  %v121_v11 = vld [vmem:[#allocation2 + $0x2d0] sm:$0xff]  ;;  %308 = vmatpush1.msra.mxu0 %v59_v6  ;;  %v56_v12 = vld [vmem:[#allocation2 + $0xc8] sm:$0xff]  ;;  %v1219_v14 = vld [vmem:[#allocation2 + $0xc0] sm:$0xff] }
  0x12   :  { %379 = vmatpush1.msra.mxu1 %v123_v7  ;;  %v120_v13 = vld [vmem:[#allocation2 + $0x2c8] sm:$0xff]  ;;  %309 = vmatprep.subr.mxu0 %v58_v8  ;;  %v119_v15 = vld [vmem:[#allocation2 + $0x2c0] sm:$0xff]  ;;  %v1221_v16 = vld [vmem:[#allocation2 + $0xb8] sm:$0xff] }
  0x13   :  { %380 = vmatprep.subr.mxu1 %v122_v9  ;;  %310 = vmatpush1.msra.mxu0 %v57_v10  ;;  %v118_v17 = vld [vmem:[#allocation2 + $0x2b8] sm:$0xff]  ;;  %v1223_v18 = vld [vmem:[#allocation2 + $0xb0] sm:$0xff]  ;;  %v1226_v20 = vld [vmem:[#allocation2 + $0xa8] sm:$0xff] }
  0x14   :  { %381 = vmatpush1.msra.mxu1 %v121_v11  ;;  %311 = vmatprep.subr.mxu0 %v56_v12  ;;  %v117_v19 = vld [vmem:[#allocation2 + $0x2b0] sm:$0xff]  ;;  %v116_v21 = vld [vmem:[#allocation2 + $0x2a8] sm:$0xff]  ;;  %v1229_v22 = vld [vmem:[#allocation2 + $0xa0] sm:$0xff] }
  0x15   :  { %382 = vmatprep.subr.mxu1 %v120_v13  ;;  %312 = vmatpush1.msra.mxu0 %v1219_v14  ;;  %v115_v23 = vld [vmem:[#allocation2 + $0x2a0] sm:$0xff]  ;;  %v1232_v24 = vld [vmem:[#allocation2 + $0x98] sm:$0xff]  ;;  %v1235_v26 = vld [vmem:[#allocation2 + $0x90] sm:$0xff] }
  0x16   :  { %383 = vmatpush1.msra.mxu1 %v119_v15  ;;  %313 = vmatprep.subr.mxu0 %v1221_v16  ;;  %v114_v25 = vld [vmem:[#allocation2 + $0x298] sm:$0xff]  ;;  %v113_v27 = vld [vmem:[#allocation2 + $0x290] sm:$0xff]  ;;  %v1238_v28 = vld [vmem:[#allocation2 + $0x88] sm:$0xff] }
  0x17   :  { %384 = vmatprep.subr.mxu1 %v118_v17  ;;  %314 = vmatpush1.msra.mxu0 %v1223_v18  ;;  %v112_v29 = vld [vmem:[#allocation2 + $0x288] sm:$0xff]  ;;  %v1241_v30 = vld [vmem:[#allocation2 + $0x80] sm:$0xff]  ;;  %v1244_v32 = vld [vmem:[#allocation2 + $0x78] sm:$0xff] }
  0x18   :  { %385 = vmatpush1.msra.mxu1 %v117_v19  ;;  %315 = vmatprep.subr.mxu0 %v1226_v20  ;;  %v111_v31 = vld [vmem:[#allocation2 + $0x280] sm:$0xff]  ;;  %v110_v33 = vld [vmem:[#allocation2 + $0x278] sm:$0xff]  ;;  %v1247_v34 = vld [vmem:[#allocation2 + $0x70] sm:$0xff] }
  0x19   :  { %386 = vmatprep.subr.mxu1 %v116_v21  ;;  %316 = vmatpush1.msra.mxu0 %v1229_v22  ;;  %v109_v35 = vld [vmem:[#allocation2 + $0x270] sm:$0xff]  ;;  %v1250_v36 = vld [vmem:[#allocation2 + $0x68] sm:$0xff]  ;;  %v1253_v38 = vld [vmem:[#allocation2 + $0x60] sm:$0xff] }
  0x1a   :  { %387 = vmatpush1.msra.mxu1 %v115_v23  ;;  %317 = vmatprep.subr.mxu0 %v1232_v24  ;;  %v108_v37 = vld [vmem:[#allocation2 + $0x268] sm:$0xff]  ;;  %v107_v39 = vld [vmem:[#allocation2 + $0x260] sm:$0xff]  ;;  %v1256_v40 = vld [vmem:[#allocation2 + $0x58] sm:$0xff] }
  0x1b   :  { %388 = vmatprep.subr.mxu1 %v114_v25  ;;  %318 = vmatpush1.msra.mxu0 %v1235_v26  ;;  %v106_v41 = vld [vmem:[#allocation2 + $0x258] sm:$0xff]  ;;  %v1259_v42 = vld [vmem:[#allocation2 + $0x50] sm:$0xff]  ;;  %v1262_v44 = vld [vmem:[#allocation2 + $0x48] sm:$0xff] }
  0x1c   :  { %389 = vmatpush1.msra.mxu1 %v113_v27  ;;  %319 = vmatprep.subr.mxu0 %v1238_v28  ;;  %v105_v43 = vld [vmem:[#allocation2 + $0x250] sm:$0xff]  ;;  %v104_v45 = vld [vmem:[#allocation2 + $0x248] sm:$0xff]  ;;  %v1265_v46 = vld [vmem:[#allocation2 + $0x40] sm:$0xff] }
  0x1d   :  { %390 = vmatprep.subr.mxu1 %v112_v29  ;;  %320 = vmatpush1.msra.mxu0 %v1241_v30  ;;  %v103_v47 = vld [vmem:[#allocation2 + $0x240] sm:$0xff]  ;;  %v1268_v48 = vld [vmem:[#allocation2 + $0x38] sm:$0xff]  ;;  %v1271_v50 = vld [vmem:[#allocation2 + $0x30] sm:$0xff] }
  0x1e   :  { %391 = vmatpush1.msra.mxu1 %v111_v31  ;;  %321 = vmatprep.subr.mxu0 %v1244_v32  ;;  %v102_v49 = vld [vmem:[#allocation2 + $0x238] sm:$0xff]  ;;  %v101_v51 = vld [vmem:[#allocation2 + $0x230] sm:$0xff]  ;;  %v1274_v52 = vld [vmem:[#allocation2 + $0x28] sm:$0xff] }
  0x1f   :  { %392 = vmatprep.subr.mxu1 %v110_v33  ;;  %322 = vmatpush1.msra.mxu0 %v1247_v34  ;;  %v100_v53 = vld [vmem:[#allocation2 + $0x228] sm:$0xff]  ;;  %v1277_v54 = vld [vmem:[#allocation2 + $0x20] sm:$0xff]  ;;  %v1280_v56 = vld [vmem:[#allocation2 + $0x18] sm:$0xff] }
  0x20   :  { %393 = vmatpush1.msra.mxu1 %v109_v35  ;;  %323 = vmatprep.subr.mxu0 %v1250_v36  ;;  %v99_v55 = vld [vmem:[#allocation2 + $0x220] sm:$0xff]  ;;  %v98_v57 = vld [vmem:[#allocation2 + $0x218] sm:$0xff]  ;;  %v1283_v58 = vld [vmem:[#allocation2 + $0x10] sm:$0xff] }
  0x21   :  { %394 = vmatprep.subr.mxu1 %v108_v37  ;;  %324 = vmatpush1.msra.mxu0 %v1253_v38  ;;  %v97_v59 = vld [vmem:[#allocation2 + $0x210] sm:$0xff]  ;;  %v1286_v60 = vld [vmem:[#allocation2 + $0x8] sm:$0xff]  ;;  %v1289_v62 = vld [vmem:[#allocation2] sm:$0xff] }
  0x22   :  { %395 = vmatpush1.msra.mxu1 %v107_v39  ;;  %325 = vmatprep.subr.mxu0 %v1256_v40  ;;  %v96_v61 = vld [vmem:[#allocation2 + $0x208] sm:$0xff]  ;;  %v95_v63 = vld [vmem:[#allocation2 + $0x200] sm:$0xff]  ;;  %v1292_v0 = vld [vmem:[#allocation2 + $0x1f8] sm:$0xff] }
  0x23   :  { %396 = vmatprep.subr.mxu1 %v106_v41  ;;  %326 = vmatpush1.msra.mxu0 %v1259_v42  ;;  %v158_v1 = vld [vmem:[#allocation2 + $0x3f8] sm:$0xff]  ;;  %v1295_v2 = vld [vmem:[#allocation2 + $0x1f0] sm:$0xff]  ;;  %v1298_v4 = vld [vmem:[#allocation2 + $0x1e8] sm:$0xff] }
  0x24   :  { %397 = vmatpush1.msra.mxu1 %v105_v43  ;;  %327 = vmatprep.subr.mxu0 %v1262_v44  ;;  %v157_v3 = vld [vmem:[#allocation2 + $0x3f0] sm:$0xff]  ;;  %v156_v5 = vld [vmem:[#allocation2 + $0x3e8] sm:$0xff]  ;;  %v1301_v6 = vld [vmem:[#allocation2 + $0x1e0] sm:$0xff] }
  0x25   :  { %398 = vmatprep.subr.mxu1 %v104_v45  ;;  %328 = vmatpush1.msra.mxu0 %v1265_v46  ;;  %v155_v7 = vld [vmem:[#allocation2 + $0x3e0] sm:$0xff]  ;;  %v1304_v8 = vld [vmem:[#allocation2 + $0x1d8] sm:$0xff]  ;;  %v1307_v10 = vld [vmem:[#allocation2 + $0x1d0] sm:$0xff] }
  0x26   :  { %399 = vmatpush1.msra.mxu1 %v103_v47  ;;  %329 = vmatprep.subr.mxu0 %v1268_v48  ;;  %v154_v9 = vld [vmem:[#allocation2 + $0x3d8] sm:$0xff]  ;;  %v153_v11 = vld [vmem:[#allocation2 + $0x3d0] sm:$0xff]  ;;  %v1310_v12 = vld [vmem:[#allocation2 + $0x1c8] sm:$0xff] }
  0x27   :  { %400 = vmatprep.subr.mxu1 %v102_v49  ;;  %330 = vmatpush1.msra.mxu0 %v1271_v50  ;;  %v152_v13 = vld [vmem:[#allocation2 + $0x3c8] sm:$0xff]  ;;  %v1313_v15 = vld [vmem:[#allocation2 + $0x1c0] sm:$0xff]  ;;  %v1316_v19 = vld [vmem:[#allocation2 + $0x1b8] sm:$0xff] }
  0x28   :  { %401 = vmatpush1.msra.mxu1 %v101_v51  ;;  %331 = vmatprep.subr.mxu0 %v1274_v52  ;;  %v151_v17 = vld [vmem:[#allocation2 + $0x3c0] sm:$0xff]  ;;  %v150_v21 = vld [vmem:[#allocation2 + $0x3b8] sm:$0xff]  ;;  %v1319_v23 = vld [vmem:[#allocation2 + $0x1b0] sm:$0xff] }
  0x29   :  { %402 = vmatprep.subr.mxu1 %v100_v53  ;;  %332 = vmatpush1.msra.mxu0 %v1277_v54  ;;  %v149_v25 = vld [vmem:[#allocation2 + $0x3b0] sm:$0xff]  ;;  %v1322_v27 = vld [vmem:[#allocation2 + $0x1a8] sm:$0xff]  ;;  %v1325_v31 = vld [vmem:[#allocation2 + $0x1a0] sm:$0xff] }
  0x2a   :  { %403 = vmatpush1.msra.mxu1 %v99_v55  ;;  %333 = vmatprep.subr.mxu0 %v1280_v56  ;;  %v148_v29 = vld [vmem:[#allocation2 + $0x3a8] sm:$0xff]  ;;  %v147_v33 = vld [vmem:[#allocation2 + $0x3a0] sm:$0xff]  ;;  %v1328_v35 = vld [vmem:[#allocation2 + $0x198] sm:$0xff] }
  0x2b   :  { %404 = vmatprep.subr.mxu1 %v98_v57  ;;  %334 = vmatpush1.msra.mxu0 %v1283_v58  ;;  %v146_v37 = vld [vmem:[#allocation2 + $0x398] sm:$0xff]  ;;  %v1331_v39 = vld [vmem:[#allocation2 + $0x190] sm:$0xff]  ;;  %v1334_v43 = vld [vmem:[#allocation2 + $0x188] sm:$0xff] }
  0x2c   :  { %405 = vmatpush1.msra.mxu1 %v97_v59  ;;  %335 = vmatprep.subr.mxu0 %v1286_v60  ;;  %v145_v41 = vld [vmem:[#allocation2 + $0x390] sm:$0xff]  ;;  %v144_v45 = vld [vmem:[#allocation2 + $0x388] sm:$0xff]  ;;  %v1337_v47 = vld [vmem:[#allocation2 + $0x180] sm:$0xff] }
  0x2d   :  { %406 = vmatprep.subr.mxu1 %v96_v61  ;;  %336 = vmatpush1.msra.mxu0 %v1289_v62  ;;  %v143_v49 = vld [vmem:[#allocation2 + $0x380] sm:$0xff]  ;;  %v1340_v51 = vld [vmem:[#allocation2 + $0x178] sm:$0xff]  ;;  %v1343_v55 = vld [vmem:[#allocation2 + $0x170] sm:$0xff] }
  0x2e   :  { %407 = vmatpush1.msra.mxu1 %v95_v63  ;;  %337 = vmatprep.subr.mxu0 %v1292_v0  ;;  %v142_v53 = vld [vmem:[#allocation2 + $0x378] sm:$0xff]  ;;  %v141_v57 = vld [vmem:[#allocation2 + $0x370] sm:$0xff]  ;;  %v1346_v59 = vld [vmem:[#allocation2 + $0x168] sm:$0xff] }
  0x2f   :  { %408 = vmatprep.subr.mxu1 %v158_v1  ;;  %338 = vmatpush2.msra.mxu0 %v1295_v2  ;;  %v140_v61 = vld [vmem:[#allocation2 + $0x368] sm:$0xff]  ;;  %v1349_v63 = vld [vmem:[#allocation2 + $0x160] sm:$0xff] }
  0x30   :  { %409 = vmatpush2.msra.mxu1 %v157_v3  ;;  %339 = vmatprep.subr.mxu0 %v1298_v4  ;;  %v139_v1 = vld [vmem:[#allocation2 + $0x360] sm:$0xff]  ;;  %v1352_v3 = vld [vmem:[#allocation2 + $0x158] sm:$0xff] }
  0x31   :  { %410 = vmatprep.subr.mxu1 %v156_v5  ;;  %340 = vmatpush2.msra.mxu0 %v1301_v6  ;;  %v138_v5 = vld [vmem:[#allocation2 + $0x358] sm:$0xff] }
  0x32   :  { %411 = vmatpush2.msra.mxu1 %v155_v7  ;;  %341 = vmatprep.subr.mxu0 %v1304_v8  ;;  %v1355_v7 = vld [vmem:[#allocation2 + $0x150] sm:$0xff] }
  0x33   :  { %412 = vmatprep.subr.mxu1 %v154_v9  ;;  %342 = vmatpush2.msra.mxu0 %v1307_v10  ;;  %v137_v9 = vld [vmem:[#allocation2 + $0x350] sm:$0xff] }
  0x34   :  { %413 = vmatpush2.msra.mxu1 %v153_v11  ;;  %343 = vmatprep.subr.mxu0 %v1310_v12  ;;  %v1358_v11 = vld [vmem:[#allocation2 + $0x148] sm:$0xff] }
  0x35   :  { %414 = vmatprep.subr.mxu1 %v152_v13  ;;  %344 = vmatpush2.msra.mxu0 %v1313_v15  ;;  %v136_v13 = vld [vmem:[#allocation2 + $0x348] sm:$0xff] }
  0x36   :  { %415 = vmatpush2.msra.mxu1 %v151_v17  ;;  %345 = vmatprep.subr.mxu0 %v1316_v19  ;;  %v1361_v17 = vld [vmem:[#allocation2 + $0x140] sm:$0xff] }
  0x37   :  { %416 = vmatprep.subr.mxu1 %v150_v21  ;;  %346 = vmatpush2.msra.mxu0 %v1319_v23  ;;  %v135_v21 = vld [vmem:[#allocation2 + $0x340] sm:$0xff] }
  0x38   :  { %417 = vmatpush2.msra.mxu1 %v149_v25  ;;  %347 = vmatprep.subr.mxu0 %v1322_v27  ;;  %v1364_v25 = vld [vmem:[#allocation2 + $0x138] sm:$0xff] }
  0x39   :  { %418 = vmatprep.subr.mxu1 %v148_v29  ;;  %348 = vmatpush2.msra.mxu0 %v1325_v31  ;;  %2164 = vst [vmem:[#allocation5_spill] sm:$0xff] %v1364_v25  ;;  %v134_v29 = vld [vmem:[#allocation2 + $0x338] sm:$0xff] }
  0x3a   :  { %419 = vmatpush2.msra.mxu1 %v147_v33  ;;  %349 = vmatprep.subr.mxu0 %v1328_v35  ;;  %v1367_v33 = vld [vmem:[#allocation2 + $0x130] sm:$0xff] }
  0x3b   :  { %420 = vmatprep.subr.mxu1 %v146_v37  ;;  %350 = vmatpush2.msra.mxu0 %v1331_v39  ;;  %2165 = vst [vmem:[#allocation6_spill] sm:$0xff] %v1367_v33  ;;  %v133_v37 = vld [vmem:[#allocation2 + $0x330] sm:$0xff] }
  0x3c   :  { %421 = vmatpush2.msra.mxu1 %v145_v41  ;;  %351 = vmatprep.subr.mxu0 %v1334_v43  ;;  %v1370_v41 = vld [vmem:[#allocation2 + $0x128] sm:$0xff] }
  0x3d   :  { %422 = vmatprep.subr.mxu1 %v144_v45  ;;  %352 = vmatpush2.msra.mxu0 %v1337_v47  ;;  %v132_v45 = vld [vmem:[#allocation2 + $0x328] sm:$0xff] }
  0x3e   :  { %423 = vmatpush2.msra.mxu1 %v143_v49  ;;  %353 = vmatprep.subr.mxu0 %v1340_v51  ;;  %v1373_v49 = vld [vmem:[#allocation2 + $0x120] sm:$0xff] }
  0x3f   :  { %424 = vmatprep.subr.mxu1 %v142_v53  ;;  %354 = vmatpush2.msra.mxu0 %v1343_v55  ;;  %2166 = vst [vmem:[#allocation7_spill] sm:$0xff] %v1373_v49  ;;  %v131_v53 = vld [vmem:[#allocation2 + $0x320] sm:$0xff] }
  0x40   :  { %425 = vmatpush2.msra.mxu1 %v141_v57  ;;  %355 = vmatprep.subr.mxu0 %v1346_v59  ;;  %v289_v57 = vld [vmem:[%s2025_s0] sm:$0xff] }
  0x41   :  { %426 = vmatprep.subr.mxu1 %v140_v61  ;;  %356 = vmatpush2.msra.mxu0 %v1349_v63  ;;  %v1379_v61 = vld [vmem:[#allocation2 + $0x118] sm:$0xff] }
  0x42   :  { %427 = vmatpush2.msra.mxu1 %v139_v1  ;;  %357 = vmatprep.subr.mxu0 %v1352_v3  ;;  %2167 = vst [vmem:[#allocation8_spill] sm:$0xff] %v1379_v61  ;;  %v130_v1 = vld [vmem:[#allocation2 + $0x318] sm:$0xff] }
  0x43   :  { %428 = vmatprep.subr.mxu1 %v138_v5  ;;  %358 = vmatpush2.msra.mxu0 %v1355_v7  ;;  %v290_v5 = vld [vmem:[%s2025_s0 + $0x8] sm:$0xff] }
  0x44   :  { %429 = vmatpush2.msra.mxu1 %v137_v9  ;;  %359 = vmatprep.subr.mxu0 %v1358_v11  ;;  %v1385_v9 = vld [vmem:[#allocation2 + $0x110] sm:$0xff] }
  0x45   :  { %430 = vmatprep.subr.mxu1 %v136_v13  ;;  %360 = vmatpush2.msra.mxu0 %v1361_v17  ;;  %2168 = vst [vmem:[#allocation9_spill] sm:$0xff] %v1385_v9  ;;  %v129_v13 = vld [vmem:[#allocation2 + $0x310] sm:$0xff] }
  0x46   :  { %431 = vmatpush2.msra.mxu1 %v135_v21  ;;  %361 = vmatprep.subr.mxu0 %v1364_v25  ;;  %v1388_v21 = vld [vmem:[#allocation2 + $0x108] sm:$0xff]  ;;  %v298_v25 = vcombine.high %v290_v5, %v290_v5 }
  0x47   :  { %432 = vmatprep.subr.mxu1 %v134_v29  ;;  %362 = vmatpush2.msra.mxu0 %v1367_v33  ;;  %2169 = vst [vmem:[#allocation10_spill] sm:$0xff] %v1388_v21  ;;  %v1390_v29 = vld [vmem:[#allocation2 + $0x308] sm:$0xff]  ;;  %v1393_v33 = vld [vmem:[#allocation2 + $0x100] sm:$0xff] }
  0x48   :  { %433 = vmatpush2.msra.mxu1 %v133_v37  ;;  %363 = vmatprep.subr.mxu0 %v1370_v41  ;;  %2170 = vst [vmem:[#allocation11_spill] sm:$0xff] %v1390_v29  ;;  %v297_v37 = vcombine.high %v289_v57, %v289_v57  ;;  %2171 = vst [vmem:[#allocation12_spill] sm:$0xff] %v1393_v33 }
  0x49   :  { %434 = vmatprep.subr.mxu1 %v132_v45  ;;  %364 = vmatpush2.msra.mxu0 %v1373_v49  ;;  %v1396_v45 = vld [vmem:[#allocation2 + $0x300] sm:$0xff]  ;;  %v1403_v49 = vld [vmem:[#allocation2 + $0x6f8] sm:$0xff] }
  0x4a   :  { %435 = vmatpush2.msra.mxu1 %v131_v53  ;;  %365 = vmatprep.subr.mxu0 %v1379_v61  ;;  %2172 = vst [vmem:[#allocation13_spill] sm:$0xff] %v1396_v45  ;;  %v1401_v53 = vld [vmem:[#allocation2 + $0x4f8] sm:$0xff]  ;;  %2174 = vst [vmem:[#allocation15_spill] sm:$0xff] %v1403_v49  ;;  %v1786_v61 = vld [vmem:[#allocation2 + $0x700] sm:$0xff] }
  0x4b   :  { %436 = vmatprep.subr.mxu1 %v130_v1  ;;  %366 = vmatpush2.msra.mxu0 %v1385_v9  ;;  %2173 = vst [vmem:[#allocation14_spill] sm:$0xff] %v1401_v53  ;;  %v1406_v1 = vld [vmem:[#allocation2 + $0x4f0] sm:$0xff] }
  0x4c   :  { %437 = vmatpush2.msra.mxu1 %v129_v13  ;;  %367 = vmatprep.subr.mxu0 %v1388_v21  ;;  %2175 = vst [vmem:[#allocation16_spill] sm:$0xff] %v1406_v1  ;;  %v1408_v9 = vld [vmem:[#allocation2 + $0x6f0] sm:$0xff]  ;;  %v1410_v13 = vld [vmem:[#allocation2 + $0x4e8] sm:$0xff] }
  0x4d   :  { %438 = vmatprep.subr.mxu1 %v1390_v29  ;;  %368 = vmatpush2.msra.mxu0 %v1393_v33  ;;  %2176 = vst [vmem:[#allocation17_spill] sm:$0xff] %v1408_v9  ;;  %2177 = vst [vmem:[#allocation18_spill] sm:$0xff] %v1410_v13  ;;  %v1412_v21 = vld [vmem:[#allocation2 + $0x6e8] sm:$0xff]  ;;  %v1418_v29 = vld [vmem:[#allocation2 + $0x6e0] sm:$0xff] }
  0x4e   :  { %369 = vmatprep.mubr.f32.mxu0 %v297_v37  ;;  %439 = vmatpush2.msra.mxu1 %v1396_v45  ;;  %2178 = vst [vmem:[#allocation19_spill] sm:$0xff] %v1412_v21  ;;  %v1416_v37 = vld [vmem:[#allocation2 + $0x4e0] sm:$0xff]  ;;  %2180 = vst [vmem:[#allocation21_spill] sm:$0xff] %v1418_v29  ;;  %v1430_v45 = vld [vmem:[#allocation2 + $0x6d0] sm:$0xff] }
  0x4f   :  { %440 = vmatprep.mubr.f32.mxu1 %v298_v25  ;;  %370 = vmatmul.mubr.f32.vlgmr.msra.gmra.mxu0 %v289_v57  ;;  %2179 = vst [vmem:[#allocation20_spill] sm:$0xff] %v1416_v37  ;;  %v1422_v25 = vld [vmem:[#allocation2 + $0x4d8] sm:$0xff]  ;;  %2184 = vst [vmem:[#allocation25_spill] sm:$0xff] %v1430_v45 }
  0x50   :  { %441 = vmatmul.mubr.f32.vlgmr.msra.gmra.mxu1 %v290_v5  ;;  %447 = vmatprep.subr.mxu0 %v1401_v53  ;;  %2181 = vst [vmem:[#allocation22_spill] sm:$0xff] %v1422_v25  ;;  %v1424_v57 = vld [vmem:[#allocation2 + $0x6d8] sm:$0xff]  ;;  %v1428_v5 = vld [vmem:[#allocation2 + $0x4d0] sm:$0xff] }
  0x51   :  { %518 = vmatprep.subr.mxu1 %v1403_v49  ;;  %448 = vmatpush1.msra.mxu0 %v1406_v1  ;;  %2182 = vst [vmem:[#allocation23_spill] sm:$0xff] %v1424_v57  ;;  %2183 = vst [vmem:[#allocation24_spill] sm:$0xff] %v1428_v5  ;;  %v1434_v49 = vld [vmem:[#allocation2 + $0x4c8] sm:$0xff]  ;;  %v1772_v53 = vld [vmem:[#allocation2 + $0x710] sm:$0xff] }
  0x52   :  { %519 = vmatpush1.msra.mxu1 %v1408_v9  ;;  %449 = vmatprep.subr.mxu0 %v1410_v13  ;;  %2185 = vst [vmem:[#allocation26_spill] sm:$0xff] %v1434_v49  ;;  %v1436_v1 = vld [vmem:[#allocation2 + $0x6c8] sm:$0xff]  ;;  %v1440_v9 = vld [vmem:[#allocation2 + $0x4c0] sm:$0xff]  ;;  %2295 = vst [vmem:[#allocation136_spill] sm:$0xff] %v1772_v53 }
  0x53   :  { %520 = vmatprep.subr.mxu1 %v1412_v21  ;;  %450 = vmatpush1.msra.mxu0 %v1416_v37  ;;  %2186 = vst [vmem:[#allocation27_spill] sm:$0xff] %v1436_v1  ;;  %2187 = vst [vmem:[#allocation28_spill] sm:$0xff] %v1440_v9  ;;  %v1442_v13 = vld [vmem:[#allocation2 + $0x6c0] sm:$0xff]  ;;  %v1446_v21 = vld [vmem:[#allocation2 + $0x4b8] sm:$0xff] }
  0x54   :  { %521 = vmatpush1.msra.mxu1 %v1418_v29  ;;  %451 = vmatprep.subr.mxu0 %v1422_v25  ;;  %2188 = vst [vmem:[#allocation29_spill] sm:$0xff] %v1442_v13  ;;  %2189 = vst [vmem:[#allocation30_spill] sm:$0xff] %v1446_v21  ;;  %v1448_v37 = vld [vmem:[#allocation2 + $0x6b8] sm:$0xff]  ;;  %v1452_v29 = vld [vmem:[#allocation2 + $0x4b0] sm:$0xff] }
  0x55   :  { %522 = vmatprep.subr.mxu1 %v1424_v57  ;;  %452 = vmatpush1.msra.mxu0 %v1428_v5  ;;  %2190 = vst [vmem:[#allocation31_spill] sm:$0xff] %v1448_v37  ;;  %2191 = vst [vmem:[#allocation32_spill] sm:$0xff] %v1452_v29  ;;  %v1454_v25 = vld [vmem:[#allocation2 + $0x6b0] sm:$0xff]  ;;  %v1458_v57 = vld [vmem:[#allocation2 + $0x4a8] sm:$0xff] }
  0x56   :  { %523 = vmatpush1.msra.mxu1 %v1430_v45  ;;  %453 = vmatprep.subr.mxu0 %v1434_v49  ;;  %2192 = vst [vmem:[#allocation33_spill] sm:$0xff] %v1454_v25  ;;  %2193 = vst [vmem:[#allocation34_spill] sm:$0xff] %v1458_v57  ;;  %v1460_v5 = vld [vmem:[#allocation2 + $0x6a8] sm:$0xff]  ;;  %v1464_v45 = vld [vmem:[#allocation2 + $0x4a0] sm:$0xff] }
  0x57   :  { %524 = vmatprep.subr.mxu1 %v1436_v1  ;;  %454 = vmatpush1.msra.mxu0 %v1440_v9  ;;  %2194 = vst [vmem:[#allocation35_spill] sm:$0xff] %v1460_v5  ;;  %2195 = vst [vmem:[#allocation36_spill] sm:$0xff] %v1464_v45  ;;  %v1466_v49 = vld [vmem:[#allocation2 + $0x6a0] sm:$0xff]  ;;  %v1470_v1 = vld [vmem:[#allocation2 + $0x498] sm:$0xff] }
  0x58   :  { %525 = vmatpush1.msra.mxu1 %v1442_v13  ;;  %455 = vmatprep.subr.mxu0 %v1446_v21  ;;  %2196 = vst [vmem:[#allocation37_spill] sm:$0xff] %v1466_v49  ;;  %2197 = vst [vmem:[#allocation38_spill] sm:$0xff] %v1470_v1  ;;  %v1472_v9 = vld [vmem:[#allocation2 + $0x698] sm:$0xff]  ;;  %v1476_v13 = vld [vmem:[#allocation2 + $0x490] sm:$0xff] }
  0x59   :  { %526 = vmatprep.subr.mxu1 %v1448_v37  ;;  %456 = vmatpush1.msra.mxu0 %v1452_v29  ;;  %2198 = vst [vmem:[#allocation39_spill] sm:$0xff] %v1472_v9  ;;  %2199 = vst [vmem:[#allocation40_spill] sm:$0xff] %v1476_v13  ;;  %v1478_v21 = vld [vmem:[#allocation2 + $0x690] sm:$0xff]  ;;  %v1482_v37 = vld [vmem:[#allocation2 + $0x488] sm:$0xff] }
  0x5a   :  { %527 = vmatpush1.msra.mxu1 %v1454_v25  ;;  %457 = vmatprep.subr.mxu0 %v1458_v57  ;;  %2200 = vst [vmem:[#allocation41_spill] sm:$0xff] %v1478_v21  ;;  %2201 = vst [vmem:[#allocation42_spill] sm:$0xff] %v1482_v37  ;;  %v1484_v29 = vld [vmem:[#allocation2 + $0x688] sm:$0xff]  ;;  %v1488_v25 = vld [vmem:[#allocation2 + $0x480] sm:$0xff] }
  0x5b   :  { %528 = vmatprep.subr.mxu1 %v1460_v5  ;;  %458 = vmatpush1.msra.mxu0 %v1464_v45  ;;  %2202 = vst [vmem:[#allocation43_spill] sm:$0xff] %v1484_v29  ;;  %2203 = vst [vmem:[#allocation44_spill] sm:$0xff] %v1488_v25  ;;  %v1490_v57 = vld [vmem:[#allocation2 + $0x680] sm:$0xff]  ;;  %v1494_v5 = vld [vmem:[#allocation2 + $0x478] sm:$0xff] }
  0x5c   :  { %529 = vmatpush1.msra.mxu1 %v1466_v49  ;;  %459 = vmatprep.subr.mxu0 %v1470_v1  ;;  %2204 = vst [vmem:[#allocation45_spill] sm:$0xff] %v1490_v57  ;;  %2205 = vst [vmem:[#allocation46_spill] sm:$0xff] %v1494_v5  ;;  %v1496_v45 = vld [vmem:[#allocation2 + $0x678] sm:$0xff]  ;;  %v1500_v49 = vld [vmem:[#allocation2 + $0x470] sm:$0xff] }
  0x5d   :  { %530 = vmatprep.subr.mxu1 %v1472_v9  ;;  %460 = vmatpush1.msra.mxu0 %v1476_v13  ;;  %2206 = vst [vmem:[#allocation47_spill] sm:$0xff] %v1496_v45  ;;  %2207 = vst [vmem:[#allocation48_spill] sm:$0xff] %v1500_v49  ;;  %v1502_v1 = vld [vmem:[#allocation2 + $0x670] sm:$0xff]  ;;  %v1506_v9 = vld [vmem:[#allocation2 + $0x468] sm:$0xff] }
  0x5e   :  { %531 = vmatpush1.msra.mxu1 %v1478_v21  ;;  %461 = vmatprep.subr.mxu0 %v1482_v37  ;;  %2208 = vst [vmem:[#allocation49_spill] sm:$0xff] %v1502_v1  ;;  %2209 = vst [vmem:[#allocation50_spill] sm:$0xff] %v1506_v9  ;;  %v1508_v13 = vld [vmem:[#allocation2 + $0x668] sm:$0xff]  ;;  %v1512_v21 = vld [vmem:[#allocation2 + $0x460] sm:$0xff] }
  0x5f   :  { %532 = vmatprep.subr.mxu1 %v1484_v29  ;;  %462 = vmatpush1.msra.mxu0 %v1488_v25  ;;  %2210 = vst [vmem:[#allocation51_spill] sm:$0xff] %v1508_v13  ;;  %2211 = vst [vmem:[#allocation52_spill] sm:$0xff] %v1512_v21  ;;  %v1514_v37 = vld [vmem:[#allocation2 + $0x660] sm:$0xff]  ;;  %v1518_v29 = vld [vmem:[#allocation2 + $0x458] sm:$0xff] }
  0x60   :  { %533 = vmatpush1.msra.mxu1 %v1490_v57  ;;  %463 = vmatprep.subr.mxu0 %v1494_v5  ;;  %2212 = vst [vmem:[#allocation53_spill] sm:$0xff] %v1514_v37  ;;  %2213 = vst [vmem:[#allocation54_spill] sm:$0xff] %v1518_v29  ;;  %v1520_v25 = vld [vmem:[#allocation2 + $0x658] sm:$0xff]  ;;  %v1524_v57 = vld [vmem:[#allocation2 + $0x450] sm:$0xff] }
  0x61   :  { %534 = vmatprep.subr.mxu1 %v1496_v45  ;;  %464 = vmatpush1.msra.mxu0 %v1500_v49  ;;  %2214 = vst [vmem:[#allocation55_spill] sm:$0xff] %v1520_v25  ;;  %2215 = vst [vmem:[#allocation56_spill] sm:$0xff] %v1524_v57  ;;  %v1526_v5 = vld [vmem:[#allocation2 + $0x650] sm:$0xff]  ;;  %v1530_v45 = vld [vmem:[#allocation2 + $0x448] sm:$0xff] }
  0x62   :  { %535 = vmatpush1.msra.mxu1 %v1502_v1  ;;  %465 = vmatprep.subr.mxu0 %v1506_v9  ;;  %2216 = vst [vmem:[#allocation57_spill] sm:$0xff] %v1526_v5  ;;  %2217 = vst [vmem:[#allocation58_spill] sm:$0xff] %v1530_v45  ;;  %v1532_v49 = vld [vmem:[#allocation2 + $0x648] sm:$0xff]  ;;  %v1536_v1 = vld [vmem:[#allocation2 + $0x440] sm:$0xff] }
  0x63   :  { %536 = vmatprep.subr.mxu1 %v1508_v13  ;;  %466 = vmatpush1.msra.mxu0 %v1512_v21  ;;  %2218 = vst [vmem:[#allocation59_spill] sm:$0xff] %v1532_v49  ;;  %2219 = vst [vmem:[#allocation60_spill] sm:$0xff] %v1536_v1  ;;  %v1538_v9 = vld [vmem:[#allocation2 + $0x640] sm:$0xff]  ;;  %v1542_v13 = vld [vmem:[#allocation2 + $0x438] sm:$0xff] }
  0x64   :  { %537 = vmatpush1.msra.mxu1 %v1514_v37  ;;  %467 = vmatprep.subr.mxu0 %v1518_v29  ;;  %2220 = vst [vmem:[#allocation61_spill] sm:$0xff] %v1538_v9  ;;  %2221 = vst [vmem:[#allocation62_spill] sm:$0xff] %v1542_v13  ;;  %v1544_v21 = vld [vmem:[#allocation2 + $0x638] sm:$0xff]  ;;  %v1548_v37 = vld [vmem:[#allocation2 + $0x430] sm:$0xff] }
  0x65   :  { %538 = vmatprep.subr.mxu1 %v1520_v25  ;;  %468 = vmatpush1.msra.mxu0 %v1524_v57  ;;  %2222 = vst [vmem:[#allocation63_spill] sm:$0xff] %v1544_v21  ;;  %2223 = vst [vmem:[#allocation64_spill] sm:$0xff] %v1548_v37  ;;  %v1550_v29 = vld [vmem:[#allocation2 + $0x630] sm:$0xff]  ;;  %v1554_v25 = vld [vmem:[#allocation2 + $0x428] sm:$0xff] }
  0x66   :  { %539 = vmatpush1.msra.mxu1 %v1526_v5  ;;  %469 = vmatprep.subr.mxu0 %v1530_v45  ;;  %2224 = vst [vmem:[#allocation65_spill] sm:$0xff] %v1550_v29  ;;  %2225 = vst [vmem:[#allocation66_spill] sm:$0xff] %v1554_v25  ;;  %v1556_v57 = vld [vmem:[#allocation2 + $0x628] sm:$0xff]  ;;  %v1560_v5 = vld [vmem:[#allocation2 + $0x420] sm:$0xff] }
  0x67   :  { %540 = vmatprep.subr.mxu1 %v1532_v49  ;;  %470 = vmatpush1.msra.mxu0 %v1536_v1  ;;  %2226 = vst [vmem:[#allocation67_spill] sm:$0xff] %v1556_v57  ;;  %2227 = vst [vmem:[#allocation68_spill] sm:$0xff] %v1560_v5  ;;  %v1562_v45 = vld [vmem:[#allocation2 + $0x620] sm:$0xff]  ;;  %v1566_v49 = vld [vmem:[#allocation2 + $0x418] sm:$0xff] }
  0x68   :  { %541 = vmatpush1.msra.mxu1 %v1538_v9  ;;  %471 = vmatprep.subr.mxu0 %v1542_v13  ;;  %2228 = vst [vmem:[#allocation69_spill] sm:$0xff] %v1562_v45  ;;  %2229 = vst [vmem:[#allocation70_spill] sm:$0xff] %v1566_v49  ;;  %v1568_v1 = vld [vmem:[#allocation2 + $0x618] sm:$0xff]  ;;  %v1572_v9 = vld [vmem:[#allocation2 + $0x410] sm:$0xff] }
  0x69   :  { %542 = vmatprep.subr.mxu1 %v1544_v21  ;;  %472 = vmatpush1.msra.mxu0 %v1548_v37  ;;  %2230 = vst [vmem:[#allocation71_spill] sm:$0xff] %v1568_v1  ;;  %2231 = vst [vmem:[#allocation72_spill] sm:$0xff] %v1572_v9  ;;  %v1574_v13 = vld [vmem:[#allocation2 + $0x610] sm:$0xff]  ;;  %v1578_v21 = vld [vmem:[#allocation2 + $0x408] sm:$0xff] }
  0x6a   :  { %543 = vmatpush1.msra.mxu1 %v1550_v29  ;;  %473 = vmatprep.subr.mxu0 %v1554_v25  ;;  %2232 = vst [vmem:[#allocation73_spill] sm:$0xff] %v1574_v13  ;;  %2233 = vst [vmem:[#allocation74_spill] sm:$0xff] %v1578_v21  ;;  %v1580_v37 = vld [vmem:[#allocation2 + $0x608] sm:$0xff]  ;;  %v1584_v29 = vld [vmem:[#allocation2 + $0x400] sm:$0xff] }
  0x6b   :  { %544 = vmatprep.subr.mxu1 %v1556_v57  ;;  %474 = vmatpush1.msra.mxu0 %v1560_v5  ;;  %2234 = vst [vmem:[#allocation75_spill] sm:$0xff] %v1580_v37  ;;  %2235 = vst [vmem:[#allocation76_spill] sm:$0xff] %v1584_v29  ;;  %v1586_v25 = vld [vmem:[#allocation2 + $0x600] sm:$0xff]  ;;  %v1590_v57 = vld [vmem:[#allocation2 + $0x5f8] sm:$0xff] }
  0x6c   :  { %545 = vmatpush1.msra.mxu1 %v1562_v45  ;;  %475 = vmatprep.subr.mxu0 %v1566_v49  ;;  %2236 = vst [vmem:[#allocation77_spill] sm:$0xff] %v1586_v25  ;;  %2237 = vst [vmem:[#allocation78_spill] sm:$0xff] %v1590_v57  ;;  %v1592_v5 = vld [vmem:[#allocation2 + $0x7f8] sm:$0xff]  ;;  %v1596_v45 = vld [vmem:[#allocation2 + $0x5f0] sm:$0xff] }
  0x6d   :  { %546 = vmatprep.subr.mxu1 %v1568_v1  ;;  %476 = vmatpush1.msra.mxu0 %v1572_v9  ;;  %2238 = vst [vmem:[#allocation79_spill] sm:$0xff] %v1592_v5  ;;  %2239 = vst [vmem:[#allocation80_spill] sm:$0xff] %v1596_v45  ;;  %v1598_v49 = vld [vmem:[#allocation2 + $0x7f0] sm:$0xff]  ;;  %v1602_v1 = vld [vmem:[#allocation2 + $0x5e8] sm:$0xff] }
  0x6e   :  { %547 = vmatpush1.msra.mxu1 %v1574_v13  ;;  %477 = vmatprep.subr.mxu0 %v1578_v21  ;;  %2240 = vst [vmem:[#allocation81_spill] sm:$0xff] %v1598_v49  ;;  %2241 = vst [vmem:[#allocation82_spill] sm:$0xff] %v1602_v1  ;;  %v1604_v9 = vld [vmem:[#allocation2 + $0x7e8] sm:$0xff]  ;;  %v1608_v13 = vld [vmem:[#allocation2 + $0x5e0] sm:$0xff] }
  0x6f   :  { %548 = vmatprep.subr.mxu1 %v1580_v37  ;;  %478 = vmatpush1.msra.mxu0 %v1584_v29  ;;  %2242 = vst [vmem:[#allocation83_spill] sm:$0xff] %v1604_v9  ;;  %2243 = vst [vmem:[#allocation84_spill] sm:$0xff] %v1608_v13  ;;  %v1610_v21 = vld [vmem:[#allocation2 + $0x7e0] sm:$0xff]  ;;  %v1614_v37 = vld [vmem:[#allocation2 + $0x5d8] sm:$0xff] }
  0x70   :  { %549 = vmatpush1.msra.mxu1 %v1586_v25  ;;  %479 = vmatprep.subr.mxu0 %v1590_v57  ;;  %2244 = vst [vmem:[#allocation85_spill] sm:$0xff] %v1610_v21  ;;  %2245 = vst [vmem:[#allocation86_spill] sm:$0xff] %v1614_v37  ;;  %v1616_v29 = vld [vmem:[#allocation2 + $0x7d8] sm:$0xff]  ;;  %v1620_v25 = vld [vmem:[#allocation2 + $0x5d0] sm:$0xff] }
  0x71   :  { %550 = vmatprep.subr.mxu1 %v1592_v5  ;;  %480 = vmatpush2.msra.mxu0 %v1596_v45  ;;  %2246 = vst [vmem:[#allocation87_spill] sm:$0xff] %v1616_v29  ;;  %2247 = vst [vmem:[#allocation88_spill] sm:$0xff] %v1620_v25  ;;  %v1622_v57 = vld [vmem:[#allocation2 + $0x7d0] sm:$0xff]  ;;  %v1626_v5 = vld [vmem:[#allocation2 + $0x5c8] sm:$0xff] }
  0x72   :  { %551 = vmatpush2.msra.mxu1 %v1598_v49  ;;  %481 = vmatprep.subr.mxu0 %v1602_v1  ;;  %2248 = vst [vmem:[#allocation89_spill] sm:$0xff] %v1622_v57  ;;  %2249 = vst [vmem:[#allocation90_spill] sm:$0xff] %v1626_v5  ;;  %v1628_v45 = vld [vmem:[#allocation2 + $0x7c8] sm:$0xff]  ;;  %v1632_v49 = vld [vmem:[#allocation2 + $0x5c0] sm:$0xff] }
  0x73   :  { %552 = vmatprep.subr.mxu1 %v1604_v9  ;;  %482 = vmatpush2.msra.mxu0 %v1608_v13  ;;  %2250 = vst [vmem:[#allocation91_spill] sm:$0xff] %v1628_v45  ;;  %2251 = vst [vmem:[#allocation92_spill] sm:$0xff] %v1632_v49  ;;  %v1634_v1 = vld [vmem:[#allocation2 + $0x7c0] sm:$0xff]  ;;  %v1638_v9 = vld [vmem:[#allocation2 + $0x5b8] sm:$0xff] }
  0x74   :  { %553 = vmatpush2.msra.mxu1 %v1610_v21  ;;  %483 = vmatprep.subr.mxu0 %v1614_v37  ;;  %2252 = vst [vmem:[#allocation93_spill] sm:$0xff] %v1634_v1  ;;  %2253 = vst [vmem:[#allocation94_spill] sm:$0xff] %v1638_v9  ;;  %v1640_v13 = vld [vmem:[#allocation2 + $0x7b8] sm:$0xff]  ;;  %v1644_v21 = vld [vmem:[#allocation2 + $0x5b0] sm:$0xff] }
  0x75   :  { %554 = vmatprep.subr.mxu1 %v1616_v29  ;;  %484 = vmatpush2.msra.mxu0 %v1620_v25  ;;  %2254 = vst [vmem:[#allocation95_spill] sm:$0xff] %v1640_v13  ;;  %2255 = vst [vmem:[#allocation96_spill] sm:$0xff] %v1644_v21  ;;  %v1646_v37 = vld [vmem:[#allocation2 + $0x7b0] sm:$0xff]  ;;  %v1650_v29 = vld [vmem:[#allocation2 + $0x5a8] sm:$0xff] }
  0x76   :  { %555 = vmatpush2.msra.mxu1 %v1622_v57  ;;  %485 = vmatprep.subr.mxu0 %v1626_v5  ;;  %2256 = vst [vmem:[#allocation97_spill] sm:$0xff] %v1646_v37  ;;  %2257 = vst [vmem:[#allocation98_spill] sm:$0xff] %v1650_v29  ;;  %v1652_v25 = vld [vmem:[#allocation2 + $0x7a8] sm:$0xff]  ;;  %v1656_v57 = vld [vmem:[#allocation2 + $0x5a0] sm:$0xff] }
  0x77   :  { %556 = vmatprep.subr.mxu1 %v1628_v45  ;;  %486 = vmatpush2.msra.mxu0 %v1632_v49  ;;  %2258 = vst [vmem:[#allocation99_spill] sm:$0xff] %v1652_v25  ;;  %2259 = vst [vmem:[#allocation100_spill] sm:$0xff] %v1656_v57  ;;  %v1658_v5 = vld [vmem:[#allocation2 + $0x7a0] sm:$0xff]  ;;  %v1662_v45 = vld [vmem:[#allocation2 + $0x598] sm:$0xff] }
  0x78   :  { %557 = vmatpush2.msra.mxu1 %v1634_v1  ;;  %487 = vmatprep.subr.mxu0 %v1638_v9  ;;  %2260 = vst [vmem:[#allocation101_spill] sm:$0xff] %v1658_v5  ;;  %2261 = vst [vmem:[#allocation102_spill] sm:$0xff] %v1662_v45  ;;  %v1664_v49 = vld [vmem:[#allocation2 + $0x798] sm:$0xff]  ;;  %v1668_v1 = vld [vmem:[#allocation2 + $0x590] sm:$0xff] }
  0x79   :  { %558 = vmatprep.subr.mxu1 %v1640_v13  ;;  %488 = vmatpush2.msra.mxu0 %v1644_v21  ;;  %2262 = vst [vmem:[#allocation103_spill] sm:$0xff] %v1664_v49  ;;  %2263 = vst [vmem:[#allocation104_spill] sm:$0xff] %v1668_v1  ;;  %v1670_v9 = vld [vmem:[#allocation2 + $0x790] sm:$0xff]  ;;  %v1674_v13 = vld [vmem:[#allocation2 + $0x588] sm:$0xff] }
  0x7a   :  { %559 = vmatpush2.msra.mxu1 %v1646_v37  ;;  %489 = vmatprep.subr.mxu0 %v1650_v29  ;;  %2264 = vst [vmem:[#allocation105_spill] sm:$0xff] %v1670_v9  ;;  %2265 = vst [vmem:[#allocation106_spill] sm:$0xff] %v1674_v13  ;;  %v1676_v21 = vld [vmem:[#allocation2 + $0x788] sm:$0xff]  ;;  %v1680_v37 = vld [vmem:[#allocation2 + $0x580] sm:$0xff] }
  0x7b   :  { %560 = vmatprep.subr.mxu1 %v1652_v25  ;;  %490 = vmatpush2.msra.mxu0 %v1656_v57  ;;  %2266 = vst [vmem:[#allocation107_spill] sm:$0xff] %v1676_v21  ;;  %2267 = vst [vmem:[#allocation108_spill] sm:$0xff] %v1680_v37  ;;  %v1682_v29 = vld [vmem:[#allocation2 + $0x780] sm:$0xff]  ;;  %v1686_v25 = vld [vmem:[#allocation2 + $0x578] sm:$0xff] }
  0x7c   :  { %561 = vmatpush2.msra.mxu1 %v1658_v5  ;;  %491 = vmatprep.subr.mxu0 %v1662_v45  ;;  %2268 = vst [vmem:[#allocation109_spill] sm:$0xff] %v1682_v29  ;;  %2269 = vst [vmem:[#allocation110_spill] sm:$0xff] %v1686_v25  ;;  %v1688_v57 = vld [vmem:[#allocation2 + $0x778] sm:$0xff]  ;;  %v1692_v5 = vld [vmem:[#allocation2 + $0x570] sm:$0xff] }
  0x7d   :  { %562 = vmatprep.subr.mxu1 %v1664_v49  ;;  %492 = vmatpush2.msra.mxu0 %v1668_v1  ;;  %2270 = vst [vmem:[#allocation111_spill] sm:$0xff] %v1688_v57  ;;  %2271 = vst [vmem:[#allocation112_spill] sm:$0xff] %v1692_v5  ;;  %v1694_v45 = vld [vmem:[#allocation2 + $0x770] sm:$0xff]  ;;  %v1698_v49 = vld [vmem:[#allocation2 + $0x568] sm:$0xff] }
  0x7e   :  { %563 = vmatpush2.msra.mxu1 %v1670_v9  ;;  %493 = vmatprep.subr.mxu0 %v1674_v13  ;;  %2272 = vst [vmem:[#allocation113_spill] sm:$0xff] %v1694_v45  ;;  %2273 = vst [vmem:[#allocation114_spill] sm:$0xff] %v1698_v49  ;;  %v1700_v1 = vld [vmem:[#allocation2 + $0x768] sm:$0xff]  ;;  %v1704_v9 = vld [vmem:[#allocation2 + $0x560] sm:$0xff] }
  0x7f   :  { %564 = vmatprep.subr.mxu1 %v1676_v21  ;;  %494 = vmatpush2.msra.mxu0 %v1680_v37  ;;  %2274 = vst [vmem:[#allocation115_spill] sm:$0xff] %v1700_v1  ;;  %2275 = vst [vmem:[#allocation116_spill] sm:$0xff] %v1704_v9  ;;  %v1706_v13 = vld [vmem:[#allocation2 + $0x760] sm:$0xff]  ;;  %v1710_v21 = vld [vmem:[#allocation2 + $0x558] sm:$0xff] }
  0x80   :  { %565 = vmatpush2.msra.mxu1 %v1682_v29  ;;  %495 = vmatprep.subr.mxu0 %v1686_v25  ;;  %2276 = vst [vmem:[#allocation117_spill] sm:$0xff] %v1706_v13  ;;  %2277 = vst [vmem:[#allocation118_spill] sm:$0xff] %v1710_v21  ;;  %v1712_v37 = vld [vmem:[#allocation2 + $0x758] sm:$0xff]  ;;  %v1716_v29 = vld [vmem:[#allocation2 + $0x550] sm:$0xff] }
  0x81   :  { %566 = vmatprep.subr.mxu1 %v1688_v57  ;;  %496 = vmatpush2.msra.mxu0 %v1692_v5  ;;  %2278 = vst [vmem:[#allocation119_spill] sm:$0xff] %v1712_v37  ;;  %2279 = vst [vmem:[#allocation120_spill] sm:$0xff] %v1716_v29  ;;  %v1718_v25 = vld [vmem:[#allocation2 + $0x750] sm:$0xff]  ;;  %v1722_v57 = vld [vmem:[#allocation2 + $0x548] sm:$0xff] }
  0x82   :  { %567 = vmatpush2.msra.mxu1 %v1694_v45  ;;  %497 = vmatprep.subr.mxu0 %v1698_v49  ;;  %2280 = vst [vmem:[#allocation121_spill] sm:$0xff] %v1718_v25  ;;  %2281 = vst [vmem:[#allocation122_spill] sm:$0xff] %v1722_v57  ;;  %v1724_v5 = vld [vmem:[#allocation2 + $0x748] sm:$0xff]  ;;  %v1728_v45 = vld [vmem:[#allocation2 + $0x540] sm:$0xff] }
  0x83   :  { %568 = vmatprep.subr.mxu1 %v1700_v1  ;;  %498 = vmatpush2.msra.mxu0 %v1704_v9  ;;  %2282 = vst [vmem:[#allocation123_spill] sm:$0xff] %v1724_v5  ;;  %2283 = vst [vmem:[#allocation124_spill] sm:$0xff] %v1728_v45  ;;  %v1730_v49 = vld [vmem:[#allocation2 + $0x740] sm:$0xff]  ;;  %v1734_v1 = vld [vmem:[#allocation2 + $0x538] sm:$0xff] }
  0x84   :  { %569 = vmatpush2.msra.mxu1 %v1706_v13  ;;  %499 = vmatprep.subr.mxu0 %v1710_v21  ;;  %2284 = vst [vmem:[#allocation125_spill] sm:$0xff] %v1730_v49  ;;  %2285 = vst [vmem:[#allocation126_spill] sm:$0xff] %v1734_v1  ;;  %v1736_v9 = vld [vmem:[#allocation2 + $0x738] sm:$0xff]  ;;  %v1740_v13 = vld [vmem:[#allocation2 + $0x530] sm:$0xff] }
  0x85   :  { %570 = vmatprep.subr.mxu1 %v1712_v37  ;;  %500 = vmatpush2.msra.mxu0 %v1716_v29  ;;  %2286 = vst [vmem:[#allocation127_spill] sm:$0xff] %v1736_v9  ;;  %2287 = vst [vmem:[#allocation128_spill] sm:$0xff] %v1740_v13  ;;  %v1742_v21 = vld [vmem:[#allocation2 + $0x730] sm:$0xff]  ;;  %v1746_v37 = vld [vmem:[#allocation2 + $0x528] sm:$0xff] }
  0x86   :  { %571 = vmatpush2.msra.mxu1 %v1718_v25  ;;  %501 = vmatprep.subr.mxu0 %v1722_v57  ;;  %2288 = vst [vmem:[#allocation129_spill] sm:$0xff] %v1742_v21  ;;  %2289 = vst [vmem:[#allocation130_spill] sm:$0xff] %v1746_v37  ;;  %v1748_v29 = vld [vmem:[#allocation2 + $0x728] sm:$0xff]  ;;  %v1752_v25 = vld [vmem:[#allocation2 + $0x520] sm:$0xff] }
  0x87   :  { %572 = vmatprep.subr.mxu1 %v1724_v5  ;;  %502 = vmatpush2.msra.mxu0 %v1728_v45  ;;  %2290 = vst [vmem:[#allocation131_spill] sm:$0xff] %v1748_v29  ;;  %v1754_v57 = vld [vmem:[#allocation2 + $0x720] sm:$0xff]  ;;  %v291_v5 = vld [vmem:[%s2025_s0 + $0x10] sm:$0xff]  ;;  %v1763_v45 = vld [vmem:[#allocation2 + $0x718] sm:$0xff] }
  0x88   :  { %573 = vmatpush2.msra.mxu1 %v1730_v49  ;;  %503 = vmatprep.subr.mxu0 %v1734_v1  ;;  %2291 = vst [vmem:[#allocation132_spill] sm:$0xff] %v1754_v57  ;;  %v1761_v49 = vld [vmem:[#allocation2 + $0x518] sm:$0xff]  ;;  %2293 = vst [vmem:[#allocation134_spill] sm:$0xff] %v1763_v45  ;;  %v1770_v1 = vld [vmem:[#allocation2 + $0x510] sm:$0xff]  ;;  %v299_v33 = vcombine.high %v291_v5, %v291_v5 }
  0x89   :  { %574 = vmatprep.subr.mxu1 %v1736_v9  ;;  %504 = vmatpush2.msra.mxu0 %v1740_v13  ;;  %2292 = vst [vmem:[#allocation133_spill] sm:$0xff] %v1761_v49  ;;  %v292_v9 = vld [vmem:[%s2025_s0 + $0x18] sm:$0xff]  ;;  %2294 = vst [vmem:[#allocation135_spill] sm:$0xff] %v1770_v1  ;;  %v1778_v13 = vld [vmem:[#allocation2 + $0x708] sm:$0xff] }
  0x8a   :  { %575 = vmatpush2.msra.mxu1 %v1742_v21  ;;  %505 = vmatprep.subr.mxu0 %v1746_v37  ;;  %v1776_v21 = vld [vmem:[#allocation2 + $0x508] sm:$0xff]  ;;  %2297 = vst [vmem:[#allocation138_spill] sm:$0xff] %v1778_v13  ;;  %v1782_v37 = vld [vmem:[#allocation2 + $0x500] sm:$0xff] }
  0x8b   :  { %576 = vmatprep.subr.mxu1 %v1748_v29  ;;  %506 = vmatpush2.msra.mxu0 %v1752_v25  ;;  %2296 = vst [vmem:[#allocation137_spill] sm:$0xff] %v1776_v21  ;;  %v300_v29 = vcombine.high %v292_v9, %v292_v9 }
  0x8c   :  { %577 = vmatpush2.msra.mxu1 %v1754_v57  ;;  %507 = vmatprep.subr.mxu0 %v1761_v49  ;;  %v1096_v57 = vld [vmem:[#allocation2 + $0xf0] sm:$0xff]  ;;  %v1099_v49 = vld [vmem:[#allocation2 + $0xd8] sm:$0xff] }
  0x8d   :  { %578 = vmatprep.subr.mxu1 %v1763_v45  ;;  %508 = vmatpush2.msra.mxu0 %v1770_v1  ;;  %v1095_v45 = vld [vmem:[#allocation2 + $0xf8] sm:$0xff]  ;;  %v1097_v1 = vld [vmem:[#allocation2 + $0xe8] sm:$0xff] }
  0x8e   :  { %579 = vmatpush2.msra.mxu1 %v1772_v53  ;;  %509 = vmatprep.subr.mxu0 %v1776_v21  ;;  %v1098_v53 = vld [vmem:[#allocation2 + $0xe0] sm:$0xff]  ;;  %v1100_v21 = vld [vmem:[#allocation2 + $0xd0] sm:$0xff] }
  0x8f   :  { %580 = vmatprep.subr.mxu1 %v1778_v13  ;;  %510 = vmatpush2.msra.mxu0 %v1782_v37  ;;  %v1101_v13 = vld [vmem:[#allocation2 + $0xc8] sm:$0xff] }
  0x90   :  { %511 = vmatprep.mubr.f32.mxu0 %v299_v33  ;;  %581 = vmatpush2.msra.mxu1 %v1786_v61  ;;  %v2344_v33 = vld [vmem:[#allocation92_spill] sm:$0xff] }
  0x91   :  { %582 = vmatprep.mubr.f32.mxu1 %v300_v29  ;;  %512 = vmatmul.mubr.f32.vlgmr.msra.gmra.mxu0 %v291_v5  ;;  %v2349_v29 = vld [vmem:[#allocation102_spill] sm:$0xff] }
  0x92   :  { %583 = vmatmul.mubr.f32.vlgmr.msra.gmra.mxu1 %v292_v9  ;;  %698 = vmatprep.subr.mxu1 %v1095_v45  ;;  %v2347_v9 = vld [vmem:[#allocation98_spill] sm:$0xff]  ;;  %v2350_v45 = vld [vmem:[#allocation104_spill] sm:$0xff] }
  0x93   :  { %699 = vmatpush1.msra.mxu1 %v1096_v57  ;;  %v2354_v57 = vld [vmem:[#allocation112_spill] sm:$0xff]  ;;  %v2355_v5 = vld [vmem:[#allocation114_spill] sm:$0xff] }
  0x94   :  { %700 = vmatprep.subr.mxu1 %v1097_v1  ;;  %v2352_v1 = vld [vmem:[#allocation108_spill] sm:$0xff] }
  0x95   :  { %701 = vmatpush1.msra.mxu1 %v1098_v53  ;;  %v2351_v53 = vld [vmem:[#allocation106_spill] sm:$0xff] }
  0x96   :  { %702 = vmatprep.subr.mxu1 %v1099_v49  ;;  %v2346_v49 = vld [vmem:[#allocation96_spill] sm:$0xff] }
  0x97   :  { %703 = vmatpush1.msra.mxu1 %v1100_v21  ;;  %v2348_v21 = vld [vmem:[#allocation100_spill] sm:$0xff] }
  0x98   :  { %704 = vmatprep.subr.mxu1 %v1101_v13  ;;  %v2353_v13 = vld [vmem:[#allocation110_spill] sm:$0xff] }
  0x99   :  { %705 = vmatpush1.msra.mxu1 %v1219_v14  ;;  %v2298_v14 = vld [vmem:[#allocation5_spill] sm:$0xff] }
  0x9a   :  { %706 = vmatprep.subr.mxu1 %v1221_v16  ;;  %v2299_v16 = vld [vmem:[#allocation6_spill] sm:$0xff] }
  0x9b   :  { %707 = vmatpush1.msra.mxu1 %v1223_v18  ;;  %v2300_v18 = vld [vmem:[#allocation7_spill] sm:$0xff] }
  0x9c   :  { %708 = vmatprep.subr.mxu1 %v1226_v20  ;;  %v2301_v20 = vld [vmem:[#allocation8_spill] sm:$0xff] }
  0x9d   :  { %709 = vmatpush1.msra.mxu1 %v1229_v22  ;;  %v2302_v22 = vld [vmem:[#allocation9_spill] sm:$0xff] }
  0x9e   :  { %710 = vmatprep.subr.mxu1 %v1232_v24  ;;  %v2303_v24 = vld [vmem:[#allocation10_spill] sm:$0xff] }
  0x9f   :  { %711 = vmatpush1.msra.mxu1 %v1235_v26  ;;  %v2304_v26 = vld [vmem:[#allocation12_spill] sm:$0xff] }
  0xa0   :  { %712 = vmatprep.subr.mxu1 %v1238_v28  ;;  %v2305_v28 = vld [vmem:[#allocation14_spill] sm:$0xff] }
  0xa1   :  { %713 = vmatpush1.msra.mxu1 %v1241_v30  ;;  %v1189_v30 = vmov 0.0  }
  0xa2   :  { %714 = vmatprep.subr.mxu1 %v1244_v32  ;;  %669 = vmatprep.mubr.f32.mxu0 %v1189_v30  ;;  %v1073_v32 = vld [vmem:[%s2025_s0 + $0x20] sm:$0xff] }
  0xa3   :  { %715 = vmatpush1.msra.mxu1 %v1247_v34  ;;  %v690_v34 = vcombine.high %v1073_v32, %v1073_v32 }
  0xa4   :  { %716 = vmatprep.subr.mxu1 %v1250_v36  ;;  %v2306_v36 = vld [vmem:[#allocation16_spill] sm:$0xff] }
  0xa5   :  { %717 = vmatpush1.msra.mxu1 %v1253_v38  ;;  %762 = vmatprep.mubr.f32.mxu1 %v690_v34  ;;  %v2307_v38 = vld [vmem:[#allocation18_spill] sm:$0xff]  ;;  %v2364_v34 = vld [vmem:[#allocation133_spill] sm:$0xff] }
  0xa6   :  { %718 = vmatprep.subr.mxu1 %v1256_v40  ;;  %v2308_v40 = vld [vmem:[#allocation20_spill] sm:$0xff] }
  0xa7   :  { %719 = vmatpush1.msra.mxu1 %v1259_v42  ;;  %v2309_v42 = vld [vmem:[#allocation22_spill] sm:$0xff] }
  0xa8   :  { %720 = vmatprep.subr.mxu1 %v1262_v44  ;;  %v2310_v44 = vld [vmem:[#allocation24_spill] sm:$0xff] }
  0xa9   :  { %721 = vmatpush1.msra.mxu1 %v1265_v46  ;;  %v2311_v46 = vld [vmem:[#allocation26_spill] sm:$0xff] }
  0xaa   :  { %722 = vmatprep.subr.mxu1 %v1268_v48  ;;  %v2312_v48 = vld [vmem:[#allocation28_spill] sm:$0xff] }
  0xab   :  { %723 = vmatpush1.msra.mxu1 %v1271_v50  ;;  %v2313_v50 = vld [vmem:[#allocation30_spill] sm:$0xff] }
  0xac   :  { %724 = vmatprep.subr.mxu1 %v1274_v52  ;;  %v2314_v52 = vld [vmem:[#allocation32_spill] sm:$0xff] }
  0xad   :  { %725 = vmatpush1.msra.mxu1 %v1277_v54  ;;  %v2315_v54 = vld [vmem:[#allocation34_spill] sm:$0xff] }
  0xae   :  { %726 = vmatprep.subr.mxu1 %v1280_v56  ;;  %v2316_v56 = vld [vmem:[#allocation36_spill] sm:$0xff] }
  0xaf   :  { %727 = vmatpush1.msra.mxu1 %v1283_v58  ;;  %v2317_v58 = vld [vmem:[#allocation38_spill] sm:$0xff] }
  0xb0   :  { %728 = vmatprep.subr.mxu1 %v1286_v60  ;;  %v2318_v60 = vld [vmem:[#allocation40_spill] sm:$0xff] }
  0xb1   :  { %729 = vmatpush1.msra.mxu1 %v1289_v62  ;;  %v2319_v62 = vld [vmem:[#allocation42_spill] sm:$0xff] }
  0xb2   :  { %730 = vmatprep.subr.mxu1 %v1292_v0  ;;  %v2320_v0 = vld [vmem:[#allocation44_spill] sm:$0xff] }
  0xb3   :  { %731 = vmatpush2.msra.mxu1 %v1295_v2  ;;  %v2321_v2 = vld [vmem:[#allocation46_spill] sm:$0xff] }
  0xb4   :  { %732 = vmatprep.subr.mxu1 %v1298_v4  ;;  %v2322_v4 = vld [vmem:[#allocation48_spill] sm:$0xff] }
  0xb5   :  { %733 = vmatpush2.msra.mxu1 %v1301_v6  ;;  %v2323_v6 = vld [vmem:[#allocation50_spill] sm:$0xff] }
  0xb6   :  { %734 = vmatprep.subr.mxu1 %v1304_v8  ;;  %v2324_v8 = vld [vmem:[#allocation52_spill] sm:$0xff] }
  0xb7   :  { %735 = vmatpush2.msra.mxu1 %v1307_v10  ;;  %v2325_v10 = vld [vmem:[#allocation54_spill] sm:$0xff] }
  0xb8   :  { %736 = vmatprep.subr.mxu1 %v1310_v12  ;;  %v2326_v12 = vld [vmem:[#allocation56_spill] sm:$0xff] }
  0xb9   :  { %737 = vmatpush2.msra.mxu1 %v1313_v15  ;;  %v2327_v15 = vld [vmem:[#allocation58_spill] sm:$0xff] }
  0xba   :  { %738 = vmatprep.subr.mxu1 %v1316_v19  ;;  %v2328_v19 = vld [vmem:[#allocation60_spill] sm:$0xff] }
  0xbb   :  { %739 = vmatpush2.msra.mxu1 %v1319_v23  ;;  %v2329_v23 = vld [vmem:[#allocation62_spill] sm:$0xff] }
  0xbc   :  { %740 = vmatprep.subr.mxu1 %v1322_v27  ;;  %v2330_v27 = vld [vmem:[#allocation64_spill] sm:$0xff] }
  0xbd   :  { %741 = vmatpush2.msra.mxu1 %v1325_v31  ;;  %v2331_v31 = vld [vmem:[#allocation66_spill] sm:$0xff] }
  0xbe   :  { %742 = vmatprep.subr.mxu1 %v1328_v35  ;;  %v2332_v35 = vld [vmem:[#allocation68_spill] sm:$0xff] }
  0xbf   :  { %743 = vmatpush2.msra.mxu1 %v1331_v39  ;;  %v2333_v39 = vld [vmem:[#allocation70_spill] sm:$0xff] }
  0xc0   :  { %744 = vmatprep.subr.mxu1 %v1334_v43  ;;  %v2334_v43 = vld [vmem:[#allocation72_spill] sm:$0xff] }
  0xc1   :  { %745 = vmatpush2.msra.mxu1 %v1337_v47  ;;  %v2335_v47 = vld [vmem:[#allocation74_spill] sm:$0xff] }
  0xc2   :  { %746 = vmatprep.subr.mxu1 %v1340_v51  ;;  %v2336_v51 = vld [vmem:[#allocation76_spill] sm:$0xff] }
  0xc3   :  { %747 = vmatpush2.msra.mxu1 %v1343_v55  ;;  %v2337_v55 = vld [vmem:[#allocation78_spill] sm:$0xff] }
  0xc4   :  { %748 = vmatprep.subr.mxu1 %v1346_v59  ;;  %v2338_v59 = vld [vmem:[#allocation80_spill] sm:$0xff] }
  0xc5   :  { %749 = vmatpush2.msra.mxu1 %v1349_v63  ;;  %v2339_v63 = vld [vmem:[#allocation82_spill] sm:$0xff] }
  0xc6   :  { %750 = vmatprep.subr.mxu1 %v1352_v3  ;;  %v2340_v3 = vld [vmem:[#allocation84_spill] sm:$0xff] }
  0xc7   :  { %751 = vmatpush2.msra.mxu1 %v1355_v7  ;;  %v2341_v7 = vld [vmem:[#allocation86_spill] sm:$0xff] }
  0xc8   :  { %752 = vmatprep.subr.mxu1 %v1358_v11  ;;  %v2342_v11 = vld [vmem:[#allocation88_spill] sm:$0xff] }
  0xc9   :  { %753 = vmatpush2.msra.mxu1 %v1361_v17  ;;  %v2343_v17 = vld [vmem:[#allocation90_spill] sm:$0xff] }
  0xca   :  { %754 = vmatprep.subr.mxu1 %v2298_v14  ;;  %v2356_v14 = vld [vmem:[#allocation116_spill] sm:$0xff] }
  0xcb   :  { %755 = vmatpush2.msra.mxu1 %v2299_v16  ;;  %v2357_v16 = vld [vmem:[#allocation118_spill] sm:$0xff] }
  0xcc   :  { %756 = vmatprep.subr.mxu1 %v1370_v41  ;;  %v2345_v41 = vld [vmem:[#allocation94_spill] sm:$0xff] }
  0xcd   :  { %757 = vmatpush2.msra.mxu1 %v2300_v18  ;;  %v2358_v18 = vld [vmem:[#allocation120_spill] sm:$0xff] }
  0xce   :  { %758 = vmatprep.subr.mxu1 %v2301_v20  ;;  %v2359_v20 = vld [vmem:[#allocation122_spill] sm:$0xff] }
  0xcf   :  { %759 = vmatpush2.msra.mxu1 %v2302_v22  ;;  %v2360_v22 = vld [vmem:[#allocation124_spill] sm:$0xff] }
  0xd0   :  { %760 = vmatprep.subr.mxu1 %v2303_v24  ;;  %v2361_v24 = vld [vmem:[#allocation126_spill] sm:$0xff] }
  0xd1   :  { %761 = vmatpush2.msra.mxu1 %v2304_v26  ;;  %v2362_v26 = vld [vmem:[#allocation128_spill] sm:$0xff] }
  0xd2   :  { %840 = vmatprep.subr.mxu1 %v2305_v28  ;;  %763 = vmatmul.mubr.f32.vlgmr.msra.gmra.mxu1 %v1073_v32  ;;  %v2363_v28 = vld [vmem:[#allocation130_spill] sm:$0xff]  ;;  %v1075_v32 = vld [vmem:[%s2025_s0 + $0x30] sm:$0xff] }
  0xd3   :  { %841 = vmatpush1.msra.mxu1 %v2306_v36  ;;  %v692_v36 = vcombine.high %v1075_v32, %v1075_v32 }
  0xd4   :  { %842 = vmatprep.subr.mxu1 %v2307_v38  ;;  %v2365_v38 = vld [vmem:[#allocation135_spill] sm:$0xff] }
  0xd5   :  { %843 = vmatpush1.msra.mxu1 %v2308_v40  ;;  %v2366_v40 = vld [vmem:[#allocation137_spill] sm:$0xff]  ;;  %904 = vmatprep.mubr.f32.mxu1 %v692_v36  ;;  %v1143_v36 = vld [vmem:[#allocation2 + $0x3b0] sm:$0xff] }
  0xd6   :  { %844 = vmatprep.subr.mxu1 %v2309_v42  ;;  %v1190_v42 = vmov 0  }
  0xd7   :  { %845 = vmatpush1.msra.mxu1 %v2310_v44  ;;  %1086 = vset.pattern.permute.xlu0 %v1190_v42  ;;  %v1146_v42 = vld [vmem:[#allocation2 + $0x398] sm:$0xff] }
  0xd8   :  { %846 = vmatprep.subr.mxu1 %v2311_v46 }
  0xd9   :  { %847 = vmatpush1.msra.mxu1 %v2312_v48 }
  0xda   :  { %848 = vmatprep.subr.mxu1 %v2313_v50 }
  0xdb   :  { %849 = vmatpush1.msra.mxu1 %v2314_v52 }
  0xdc   :  { %850 = vmatprep.subr.mxu1 %v2315_v54 }
  0xdd   :  { %851 = vmatpush1.msra.mxu1 %v2316_v56 }
  0xde   :  { %852 = vmatprep.subr.mxu1 %v2317_v58 }
  0xdf   :  { %853 = vmatpush1.msra.mxu1 %v2318_v60 }
  0xe0   :  { %854 = vmatprep.subr.mxu1 %v2319_v62 }
  0xe1   :  { %855 = vmatpush1.msra.mxu1 %v2320_v0 }
  0xe2   :  { %856 = vmatprep.subr.mxu1 %v2321_v2 }
  0xe3   :  { %857 = vmatpush1.msra.mxu1 %v2322_v4 }
  0xe4   :  { %858 = vmatprep.subr.mxu1 %v2323_v6  ;;  %v1932_v6 = vld [vmem:[%s2027_s2] sm:$0xf] }
  0xe5   :  { %859 = vmatpush1.msra.mxu1 %v2324_v8 }
  0xe6   :  { %860 = vmatprep.subr.mxu1 %v2325_v10  ;;  %v1102_v10 = vld [vmem:[#allocation2 + $0x2f8] sm:$0xff] }
  0xe7   :  { %861 = vmatpush1.msra.mxu1 %v2326_v12  ;;  %v1103_v12 = vld [vmem:[#allocation2 + $0x2f0] sm:$0xff] }
  0xe8   :  { %862 = vmatprep.subr.mxu1 %v2327_v15  ;;  %v1104_v15 = vld [vmem:[#allocation2 + $0x2e8] sm:$0xff] }
  0xe9   :  { %863 = vmatpush1.msra.mxu1 %v2328_v19  ;;  %v1105_v19 = vld [vmem:[#allocation2 + $0x2e0] sm:$0xff] }
  0xea   :  { %864 = vmatprep.subr.mxu1 %v2329_v23  ;;  %v1106_v23 = vld [vmem:[#allocation2 + $0x2d8] sm:$0xff] }
  0xeb   :  { %865 = vmatpush1.msra.mxu1 %v2330_v27  ;;  %v1107_v27 = vld [vmem:[#allocation2 + $0x2d0] sm:$0xff] }
  0xec   :  { %866 = vmatprep.subr.mxu1 %v2331_v31  ;;  %v1108_v31 = vld [vmem:[#allocation2 + $0x2c8] sm:$0xff] }
  0xed   :  { %867 = vmatpush1.msra.mxu1 %v2332_v35  ;;  %v1109_v35 = vld [vmem:[#allocation2 + $0x2c0] sm:$0xff] }
  0xee   :  { %868 = vmatprep.subr.mxu1 %v2333_v39  ;;  %v1110_v39 = vld [vmem:[#allocation2 + $0x2b8] sm:$0xff] }
  0xef   :  { %869 = vmatpush1.msra.mxu1 %v2334_v43  ;;  %v1111_v43 = vld [vmem:[#allocation2 + $0x2b0] sm:$0xff] }
  0xf0   :  { %870 = vmatprep.subr.mxu1 %v2335_v47  ;;  %v1112_v47 = vld [vmem:[#allocation2 + $0x2a8] sm:$0xff] }
  0xf1   :  { %871 = vmatpush1.msra.mxu1 %v2336_v51  ;;  %v1113_v51 = vld [vmem:[#allocation2 + $0x2a0] sm:$0xff] }
  0xf2   :  { %872 = vmatprep.subr.mxu1 %v2337_v55  ;;  %v1114_v55 = vld [vmem:[#allocation2 + $0x298] sm:$0xff] }
  0xf3   :  { %873 = vmatpush2.msra.mxu1 %v2338_v59  ;;  %v1115_v59 = vld [vmem:[#allocation2 + $0x290] sm:$0xff] }
  0xf4   :  { %874 = vmatprep.subr.mxu1 %v2339_v63  ;;  %v1116_v63 = vld [vmem:[#allocation2 + $0x288] sm:$0xff] }
  0xf5   :  { %875 = vmatpush2.msra.mxu1 %v2340_v3  ;;  %v1117_v3 = vld [vmem:[#allocation2 + $0x280] sm:$0xff] }
  0xf6   :  { %876 = vmatprep.subr.mxu1 %v2341_v7  ;;  %v1118_v7 = vld [vmem:[#allocation2 + $0x278] sm:$0xff] }
  0xf7   :  { %877 = vmatpush2.msra.mxu1 %v2342_v11  ;;  %v1119_v11 = vld [vmem:[#allocation2 + $0x270] sm:$0xff] }
  0xf8   :  { %878 = vmatprep.subr.mxu1 %v2343_v17  ;;  %v1120_v17 = vld [vmem:[#allocation2 + $0x268] sm:$0xff] }
  0xf9   :  { %879 = vmatpush2.msra.mxu1 %v2344_v33  ;;  %v1121_v33 = vld [vmem:[#allocation2 + $0x260] sm:$0xff] }
  0xfa   :  { %880 = vmatprep.subr.mxu1 %v2345_v41  ;;  %v1122_v41 = vld [vmem:[#allocation2 + $0x258] sm:$0xff] }
  0xfb   :  { %881 = vmatpush2.msra.mxu1 %v2346_v49  ;;  %v1123_v49 = vld [vmem:[#allocation2 + $0x250] sm:$0xff] }
  0xfc   :  { %882 = vmatprep.subr.mxu1 %v2347_v9  ;;  %v1124_v9 = vld [vmem:[#allocation2 + $0x248] sm:$0xff] }
  0xfd   :  { %883 = vmatpush2.msra.mxu1 %v2348_v21  ;;  %v1125_v21 = vld [vmem:[#allocation2 + $0x240] sm:$0xff] }
  0xfe   :  { %884 = vmatprep.subr.mxu1 %v2349_v29  ;;  %v1126_v29 = vld [vmem:[#allocation2 + $0x238] sm:$0xff] }
  0xff   :  { %885 = vmatpush2.msra.mxu1 %v2350_v45  ;;  %v1127_v45 = vld [vmem:[#allocation2 + $0x230] sm:$0xff] }
 0x100   :  { %886 = vmatprep.subr.mxu1 %v2351_v53  ;;  %v1128_v53 = vld [vmem:[#allocation2 + $0x228] sm:$0xff] }
 0x101   :  { %887 = vmatpush2.msra.mxu1 %v2352_v1  ;;  %v1129_v1 = vld [vmem:[#allocation2 + $0x220] sm:$0xff] }
 0x102   :  { %888 = vmatprep.subr.mxu1 %v2353_v13  ;;  %v1130_v13 = vld [vmem:[#allocation2 + $0x218] sm:$0xff] }
 0x103   :  { %889 = vmatpush2.msra.mxu1 %v2354_v57  ;;  %v1131_v57 = vld [vmem:[#allocation2 + $0x210] sm:$0xff] }
 0x104   :  { %890 = vmatprep.subr.mxu1 %v2355_v5  ;;  %v1132_v5 = vld [vmem:[#allocation2 + $0x208] sm:$0xff] }
 0x105   :  { %891 = vmatpush2.msra.mxu1 %v2356_v14  ;;  %v1133_v14 = vld [vmem:[#allocation2 + $0x200] sm:$0xff] }
 0x106   :  { %892 = vmatprep.subr.mxu1 %v2357_v16  ;;  %v1134_v16 = vld [vmem:[#allocation2 + $0x3f8] sm:$0xff] }
 0x107   :  { %893 = vmatpush2.msra.mxu1 %v2358_v18  ;;  %v1135_v18 = vld [vmem:[#allocation2 + $0x3f0] sm:$0xff] }
 0x108   :  { %894 = vmatprep.subr.mxu1 %v2359_v20  ;;  %v1136_v20 = vld [vmem:[#allocation2 + $0x3e8] sm:$0xff] }
 0x109   :  { %895 = vmatpush2.msra.mxu1 %v2360_v22  ;;  %v1137_v22 = vld [vmem:[#allocation2 + $0x3e0] sm:$0xff] }
 0x10a   :  { %896 = vmatprep.subr.mxu1 %v2361_v24  ;;  %v1138_v24 = vld [vmem:[#allocation2 + $0x3d8] sm:$0xff] }
 0x10b   :  { %897 = vmatpush2.msra.mxu1 %v2362_v26  ;;  %v1139_v26 = vld [vmem:[#allocation2 + $0x3d0] sm:$0xff] }
 0x10c   :  { %898 = vmatprep.subr.mxu1 %v2363_v28  ;;  %v1140_v28 = vld [vmem:[#allocation2 + $0x3c8] sm:$0xff] }
 0x10d   :  { %899 = vmatpush2.msra.mxu1 %v1752_v25  ;;  %v288_v25 = vld [vmem:[%s2028_s3] sm:$0xf] }
 0x10e   :  { %900 = vmatprep.subr.mxu1 %v2364_v34  ;;  %591 = vperm.xlu0 %1086, %v288_v25   ;;  %v1142_v34 = vld [vmem:[#allocation2 + $0x3b8] sm:$0xff]  ;;  %v1147_v25 = vld [vmem:[#allocation2 + $0x390] sm:$0xff] }
 0x10f   :  { %901 = vmatpush2.msra.mxu1 %v2365_v38  ;;  %v371_v44 = vpop.f32.mrf.mxu0  ;;  %v1144_v38 = vld [vmem:[#allocation2 + $0x3a8] sm:$0xff] }
 0x110   :  { %902 = vmatprep.subr.mxu1 %v2366_v40  ;;  %v442_v46 = vpop.f32.mrf.mxu1  ;;  %v1145_v40 = vld [vmem:[#allocation2 + $0x3a0] sm:$0xff] }
 0x111   :  { %903 = vmatpush2.msra.mxu1 %v1782_v37  ;;  %v373_v48 = vpop.f32.mrf.mxu0  ;;  %v443_v52 = vadd.f32 %v442_v46, %v371_v44  ;;  %v1148_v44 = vld [vmem:[#allocation2 + $0x388] sm:$0xff]  ;;  %v1149_v46 = vld [vmem:[#allocation2 + $0x380] sm:$0xff] }
 0x112   :  { %905 = vmatmul.mubr.f32.vlgmr.msra.gmra.mxu1 %v1075_v32  ;;  %v444_v50 = vpop.f32.mrf.mxu1  ;;  %v1141_v32 = vld [vmem:[#allocation2 + $0x3c0] sm:$0xff] }
 0x113   :  { %1052 = vmatprep.mubr.f32.mxu1 %v1189_v30  ;;  %v445_v58 = vadd.f32 %v444_v50, %v373_v48  ;;  %v1927_v30 = vld [vmem:[%s2025_s0 + $0x28] sm:$0xff]  ;;  %v1150_v48 = vld [vmem:[#allocation2 + $0x378] sm:$0xff]  ;;  %v1151_v50 = vld [vmem:[#allocation2 + $0x370] sm:$0xff] }
 0x114   :  { %v691_v8 = vcombine.high %v1927_v30, %v1927_v30 }
 0x151   :  { %v513_v54 = vpop.f32.mrf.mxu0 }
 0x152   :  { %v584_v56 = vpop.f32.mrf.mxu1  ;;  %v514_v60 = vadd.f32 %v513_v54, %v443_v52  ;;  %v1152_v52 = vld [vmem:[#allocation2 + $0x368] sm:$0xff]  ;;  %v1153_v54 = vld [vmem:[#allocation2 + $0x360] sm:$0xff] }
 0x153   :  { %v515_v37 = vpop.f32.mrf.mxu0 }
 0x154   :  { %v516_v62 = vadd.f32 %v515_v37, %v445_v58  ;;  %v586_v0 = vpop.f32.mrf.mxu1  ;;  %v585_v4 = vadd.f32 %v584_v56, %v514_v60  ;;  %v1154_v56 = vld [vmem:[#allocation2 + $0x358] sm:$0xff]  ;;  %v1155_v58 = vld [vmem:[#allocation2 + $0x350] sm:$0xff]  ;;  %v1156_v60 = vld [vmem:[#allocation2 + $0x348] sm:$0xff] }
 0x155   :  { %v1157_v37 = vld [vmem:[#allocation2 + $0x340] sm:$0xff] }
 0x156   :  { %v587_v2 = vadd.f32 %v586_v0, %v516_v62  ;;  %v1158_v62 = vld [vmem:[#allocation2 + $0x338] sm:$0xff]  ;;  %v1159_v0 = vld [vmem:[#allocation2 + $0x330] sm:$0xff] }
 0x158   :  { %1070 = vmatprep.subr.msk.mxu0 %vm598_vm0, %v587_v2  ;;  %v1160_v2 = vld [vmem:[#allocation2 + $0x328] sm:$0xff] }
 0x159   :  { %1071 = vmatpush1.msk.msra.mxu0 %vm598_vm0, %v585_v4  ;;  %v1943_v4 = vld [vmem:[%s2025_s0 + $0x38] sm:$0xff] }
 0x15a   :  { %1072 = vmatmul.mubr.msk.f32.vlgmr.msra.gmra.mxu0 %vm594_vm1, %v1932_v6  ;;  %769 = vmatprep.subr.mxu0 %v1102_v10  ;;  %v1162_v10 = vld [vmem:[#allocation2 + $0x318] sm:$0xff] }
 0x15b   :  { %770 = vmatpush1.msra.mxu0 %v1103_v12  ;;  %833 = vmatprep.mubr.f32.mxu0 %v691_v8  ;;  %v1161_v8 = vld [vmem:[#allocation2 + $0x320] sm:$0xff]  ;;  %v1163_v12 = vld [vmem:[#allocation2 + $0x310] sm:$0xff] }
 0x15c   :  { %771 = vmatprep.subr.mxu0 %v1104_v15  ;;  %v693_v15 = vcombine.high %v1943_v4, %v1943_v4 }
 0x15d   :  { %772 = vmatpush1.msra.mxu0 %v1105_v19  ;;  %v2367_v19 = vld [vmem:[#allocation11_spill] sm:$0xff] }
 0x15e   :  { %773 = vmatprep.subr.mxu0 %v1106_v23  ;;  %v2368_v23 = vld [vmem:[#allocation13_spill] sm:$0xff] }
 0x15f   :  { %774 = vmatpush1.msra.mxu0 %v1107_v27  ;;  %v2369_v27 = vld [vmem:[#allocation15_spill] sm:$0xff] }
 0x160   :  { %775 = vmatprep.subr.mxu0 %v1108_v31  ;;  %v2370_v31 = vld [vmem:[#allocation17_spill] sm:$0xff] }
 0x161   :  { %776 = vmatpush1.msra.mxu0 %v1109_v35  ;;  %v2371_v35 = vld [vmem:[#allocation19_spill] sm:$0xff] }
 0x162   :  { %777 = vmatprep.subr.mxu0 %v1110_v39  ;;  %v2372_v39 = vld [vmem:[#allocation21_spill] sm:$0xff] }
 0x163   :  { %778 = vmatpush1.msra.mxu0 %v1111_v43  ;;  %v2373_v43 = vld [vmem:[#allocation23_spill] sm:$0xff] }
 0x164   :  { %779 = vmatprep.subr.mxu0 %v1112_v47  ;;  %v2374_v47 = vld [vmem:[#allocation25_spill] sm:$0xff] }
 0x165   :  { %780 = vmatpush1.msra.mxu0 %v1113_v51  ;;  %v2375_v51 = vld [vmem:[#allocation27_spill] sm:$0xff] }
 0x166   :  { %781 = vmatprep.subr.mxu0 %v1114_v55  ;;  %v2376_v55 = vld [vmem:[#allocation29_spill] sm:$0xff] }
 0x167   :  { %782 = vmatpush1.msra.mxu0 %v1115_v59  ;;  %v2377_v59 = vld [vmem:[#allocation31_spill] sm:$0xff] }
 0x168   :  { %783 = vmatprep.subr.mxu0 %v1116_v63  ;;  %v2379_v63 = vld [vmem:[#allocation35_spill] sm:$0xff] }
 0x169   :  { %784 = vmatpush1.msra.mxu0 %v1117_v3  ;;  %v2380_v3 = vld [vmem:[#allocation37_spill] sm:$0xff] }
 0x16a   :  { %785 = vmatprep.subr.mxu0 %v1118_v7  ;;  %v2381_v7 = vld [vmem:[#allocation39_spill] sm:$0xff] }
 0x16b   :  { %786 = vmatpush1.msra.mxu0 %v1119_v11  ;;  %v2382_v11 = vld [vmem:[#allocation41_spill] sm:$0xff] }
 0x16c   :  { %787 = vmatprep.subr.mxu0 %v1120_v17  ;;  %v2383_v17 = vld [vmem:[#allocation43_spill] sm:$0xff] }
 0x16d   :  { %788 = vmatpush1.msra.mxu0 %v1121_v33  ;;  %v2384_v33 = vld [vmem:[#allocation45_spill] sm:$0xff] }
 0x16e   :  { %789 = vmatprep.subr.mxu0 %v1122_v41  ;;  %v2385_v41 = vld [vmem:[#allocation47_spill] sm:$0xff] }
 0x16f   :  { %790 = vmatpush1.msra.mxu0 %v1123_v49  ;;  %v2386_v49 = vld [vmem:[#allocation49_spill] sm:$0xff] }
 0x170   :  { %791 = vmatprep.subr.mxu0 %v1124_v9  ;;  %v2387_v9 = vld [vmem:[#allocation51_spill] sm:$0xff] }
 0x171   :  { %792 = vmatpush1.msra.mxu0 %v1125_v21  ;;  %v2388_v21 = vld [vmem:[#allocation53_spill] sm:$0xff] }
 0x172   :  { %793 = vmatprep.subr.mxu0 %v1126_v29  ;;  %v2389_v29 = vld [vmem:[#allocation55_spill] sm:$0xff] }
 0x173   :  { %794 = vmatpush1.msra.mxu0 %v1127_v45  ;;  %v2390_v45 = vld [vmem:[#allocation57_spill] sm:$0xff] }
 0x174   :  { %795 = vmatprep.subr.mxu0 %v1128_v53  ;;  %v2391_v53 = vld [vmem:[#allocation59_spill] sm:$0xff] }
 0x175   :  { %796 = vmatpush1.msra.mxu0 %v1129_v1  ;;  %v2392_v1 = vld [vmem:[#allocation61_spill] sm:$0xff] }
 0x176   :  { %797 = vmatprep.subr.mxu0 %v1130_v13  ;;  %v2393_v13 = vld [vmem:[#allocation63_spill] sm:$0xff] }
 0x177   :  { %798 = vmatpush1.msra.mxu0 %v1131_v57  ;;  %v2394_v57 = vld [vmem:[#allocation65_spill] sm:$0xff] }
 0x178   :  { %799 = vmatprep.subr.mxu0 %v1132_v5  ;;  %v2395_v5 = vld [vmem:[#allocation67_spill] sm:$0xff] }
 0x179   :  { %800 = vmatpush1.msra.mxu0 %v1133_v14  ;;  %v2396_v14 = vld [vmem:[#allocation69_spill] sm:$0xff] }
 0x17a   :  { %801 = vmatprep.subr.mxu0 %v1134_v16  ;;  %v2397_v16 = vld [vmem:[#allocation71_spill] sm:$0xff] }
 0x17b   :  { %802 = vmatpush2.msra.mxu0 %v1135_v18  ;;  %v2398_v18 = vld [vmem:[#allocation73_spill] sm:$0xff] }
 0x17c   :  { %803 = vmatprep.subr.mxu0 %v1136_v20  ;;  %v2399_v20 = vld [vmem:[#allocation75_spill] sm:$0xff] }
 0x17d   :  { %804 = vmatpush2.msra.mxu0 %v1137_v22  ;;  %v2400_v22 = vld [vmem:[#allocation77_spill] sm:$0xff] }
 0x17e   :  { %805 = vmatprep.subr.mxu0 %v1138_v24  ;;  %v2401_v24 = vld [vmem:[#allocation79_spill] sm:$0xff] }
 0x17f   :  { %806 = vmatpush2.msra.mxu0 %v1139_v26  ;;  %v2402_v26 = vld [vmem:[#allocation81_spill] sm:$0xff] }
 0x180   :  { %807 = vmatprep.subr.mxu0 %v1140_v28  ;;  %v2403_v28 = vld [vmem:[#allocation83_spill] sm:$0xff] }
 0x181   :  { %808 = vmatpush2.msra.mxu0 %v1141_v32  ;;  %v2404_v32 = vld [vmem:[#allocation85_spill] sm:$0xff] }
 0x182   :  { %809 = vmatprep.subr.mxu0 %v1142_v34  ;;  %v2405_v34 = vld [vmem:[#allocation87_spill] sm:$0xff] }
 0x183   :  { %810 = vmatpush2.msra.mxu0 %v1143_v36  ;;  %v2406_v36 = vld [vmem:[#allocation89_spill] sm:$0xff] }
 0x184   :  { %811 = vmatprep.subr.mxu0 %v1144_v38  ;;  %v2407_v38 = vld [vmem:[#allocation91_spill] sm:$0xff] }
 0x185   :  { %812 = vmatpush2.msra.mxu0 %v1145_v40  ;;  %v2408_v40 = vld [vmem:[#allocation93_spill] sm:$0xff] }
 0x186   :  { %813 = vmatprep.subr.mxu0 %v1146_v42  ;;  %v2409_v42 = vld [vmem:[#allocation95_spill] sm:$0xff] }
 0x187   :  { %814 = vmatpush2.msra.mxu0 %v1147_v25  ;;  %v2410_v25 = vld [vmem:[#allocation97_spill] sm:$0xff] }
 0x188   :  { %815 = vmatprep.subr.mxu0 %v1148_v44  ;;  %v2411_v44 = vld [vmem:[#allocation99_spill] sm:$0xff] }
 0x189   :  { %816 = vmatpush2.msra.mxu0 %v1149_v46  ;;  %v2412_v46 = vld [vmem:[#allocation101_spill] sm:$0xff] }
 0x18a   :  { %817 = vmatprep.subr.mxu0 %v1150_v48  ;;  %v2413_v48 = vld [vmem:[#allocation103_spill] sm:$0xff] }
 0x18b   :  { %818 = vmatpush2.msra.mxu0 %v1151_v50  ;;  %v2414_v50 = vld [vmem:[#allocation105_spill] sm:$0xff] }
 0x18c   :  { %819 = vmatprep.subr.mxu0 %v1152_v52  ;;  %v2415_v52 = vld [vmem:[#allocation107_spill] sm:$0xff] }
 0x18d   :  { %820 = vmatpush2.msra.mxu0 %v1153_v54  ;;  %v2416_v54 = vld [vmem:[#allocation109_spill] sm:$0xff] }
 0x18e   :  { %821 = vmatprep.subr.mxu0 %v1154_v56  ;;  %v2417_v56 = vld [vmem:[#allocation111_spill] sm:$0xff] }
 0x18f   :  { %822 = vmatpush2.msra.mxu0 %v1155_v58  ;;  %v2418_v58 = vld [vmem:[#allocation113_spill] sm:$0xff] }
 0x190   :  { %823 = vmatprep.subr.mxu0 %v1156_v60  ;;  %v2419_v60 = vld [vmem:[#allocation115_spill] sm:$0xff] }
 0x191   :  { %824 = vmatpush2.msra.mxu0 %v1157_v37  ;;  %v2420_v37 = vld [vmem:[#allocation117_spill] sm:$0xff] }
 0x192   :  { %825 = vmatprep.subr.mxu0 %v1158_v62  ;;  %v2421_v62 = vld [vmem:[#allocation119_spill] sm:$0xff] }
 0x193   :  { %826 = vmatpush2.msra.mxu0 %v1159_v0  ;;  %v2422_v0 = vld [vmem:[#allocation121_spill] sm:$0xff] }
 0x194   :  { %827 = vmatprep.subr.mxu0 %v1160_v2  ;;  %v2423_v2 = vld [vmem:[#allocation123_spill] sm:$0xff] }
 0x195   :  { %828 = vmatpush2.msra.mxu0 %v1161_v8  ;;  %v2424_v8 = vld [vmem:[#allocation125_spill] sm:$0xff] }
 0x196   :  { %829 = vmatprep.subr.mxu0 %v1162_v10  ;;  %v2425_v10 = vld [vmem:[#allocation127_spill] sm:$0xff] }
 0x197   :  { %830 = vmatpush2.msra.mxu0 %v1163_v12  ;;  %v2426_v12 = vld [vmem:[#allocation129_spill] sm:$0xff] }
 0x198   :  { %831 = vmatprep.subr.mxu0 %v2367_v19  ;;  %v2428_v19 = vld [vmem:[#allocation132_spill] sm:$0xff] }
 0x199   :  { %832 = vmatpush2.msra.mxu0 %v2368_v23  ;;  %v2429_v23 = vld [vmem:[#allocation134_spill] sm:$0xff] }
 0x19a   :  { %834 = vmatmul.mubr.f32.vlgmr.msra.gmra.mxu0 %v1927_v30  ;;  %911 = vmatprep.subr.mxu0 %v2369_v27  ;;  %v2378_v30 = vld [vmem:[#allocation33_spill] sm:$0xff]  ;;  %v2430_v27 = vld [vmem:[#allocation136_spill] sm:$0xff] }
 0x19b   :  { %912 = vmatpush1.msra.mxu0 %v2370_v31  ;;  %975 = vmatprep.mubr.f32.mxu0 %v693_v15  ;;  %v2427_v15 = vld [vmem:[#allocation131_spill] sm:$0xff]  ;;  %v2431_v31 = vld [vmem:[#allocation138_spill] sm:$0xff] }
 0x19c   :  { %913 = vmatprep.subr.mxu0 %v2371_v35  ;;  %v592_v35 = vpop.permute.xlu0 %591 }
 0x19d   :  { %914 = vmatpush1.msra.mxu0 %v2372_v39 }
 0x19e   :  { %915 = vmatprep.subr.mxu0 %v2373_v43 }
 0x19f   :  { %916 = vmatpush1.msra.mxu0 %v2374_v47 }
 0x1a0   :  { %917 = vmatprep.subr.mxu0 %v2375_v51 }
 0x1a1   :  { %918 = vmatpush1.msra.mxu0 %v2376_v55 }
 0x1a2   :  { %919 = vmatprep.subr.mxu0 %v2377_v59  ;;  %v764_v59 = vpop.f32.mrf.mxu1 }
 0x1a3   :  { %920 = vmatpush1.msra.mxu0 %v2378_v30 }
 0x1a4   :  { %921 = vmatprep.subr.mxu0 %v2379_v63  ;;  %v766_v30 = vpop.f32.mrf.mxu1 }
 0x1a5   :  { %922 = vmatpush1.msra.mxu0 %v2380_v3 }
 0x1a6   :  { %923 = vmatprep.subr.mxu0 %v2381_v7 }
 0x1a7   :  { %924 = vmatpush1.msra.mxu0 %v2382_v11 }
 0x1a8   :  { %925 = vmatprep.subr.mxu0 %v2383_v17 }
 0x1a9   :  { %926 = vmatpush1.msra.mxu0 %v2384_v33 }
 0x1aa   :  { %927 = vmatprep.subr.mxu0 %v2385_v41 }
 0x1ab   :  { %928 = vmatpush1.msra.mxu0 %v2386_v49 }
 0x1ac   :  { %929 = vmatprep.subr.mxu0 %v2387_v9 }
 0x1ad   :  { %930 = vmatpush1.msra.mxu0 %v2388_v21 }
 0x1ae   :  { %931 = vmatprep.subr.mxu0 %v2389_v29 }
 0x1af   :  { %932 = vmatpush1.msra.mxu0 %v2390_v45 }
 0x1b0   :  { %933 = vmatprep.subr.mxu0 %v2391_v53 }
 0x1b1   :  { %934 = vmatpush1.msra.mxu0 %v2392_v1 }
 0x1b2   :  { %935 = vmatprep.subr.mxu0 %v2393_v13 }
 0x1b3   :  { %936 = vmatpush1.msra.mxu0 %v2394_v57 }
 0x1b4   :  { %937 = vmatprep.subr.mxu0 %v2395_v5 }
 0x1b5   :  { %938 = vmatpush1.msra.mxu0 %v2396_v14 }
 0x1b6   :  { %939 = vmatprep.subr.mxu0 %v2397_v16 }
 0x1b7   :  { %940 = vmatpush1.msra.mxu0 %v2398_v18 }
 0x1b8   :  { %941 = vmatprep.subr.mxu0 %v2399_v20 }
 0x1b9   :  { %942 = vmatpush1.msra.mxu0 %v2400_v22 }
 0x1ba   :  { %943 = vmatprep.subr.mxu0 %v2401_v24 }
 0x1bb   :  { %944 = vmatpush2.msra.mxu0 %v2402_v26 }
 0x1bc   :  { %945 = vmatprep.subr.mxu0 %v2403_v28 }
 0x1bd   :  { %946 = vmatpush2.msra.mxu0 %v2404_v32 }
 0x1be   :  { %947 = vmatprep.subr.mxu0 %v2405_v34 }
 0x1bf   :  { %948 = vmatpush2.msra.mxu0 %v2406_v36 }
 0x1c0   :  { %949 = vmatprep.subr.mxu0 %v2407_v38 }
 0x1c1   :  { %950 = vmatpush2.msra.mxu0 %v2408_v40 }
 0x1c2   :  { %951 = vmatprep.subr.mxu0 %v2409_v42 }
 0x1c3   :  { %952 = vmatpush2.msra.mxu0 %v2410_v25 }
 0x1c4   :  { %953 = vmatprep.subr.mxu0 %v2411_v44 }
 0x1c5   :  { %954 = vmatpush2.msra.mxu0 %v2412_v46 }
 0x1c6   :  { %955 = vmatprep.subr.mxu0 %v2413_v48 }
 0x1c7   :  { %956 = vmatpush2.msra.mxu0 %v2414_v50 }
 0x1c8   :  { %957 = vmatprep.subr.mxu0 %v2415_v52 }
 0x1c9   :  { %958 = vmatpush2.msra.mxu0 %v2416_v54 }
 0x1ca   :  { %959 = vmatprep.subr.mxu0 %v2417_v56 }
 0x1cb   :  { %960 = vmatpush2.msra.mxu0 %v2418_v58 }
 0x1cc   :  { %961 = vmatprep.subr.mxu0 %v2419_v60 }
 0x1cd   :  { %962 = vmatpush2.msra.mxu0 %v2420_v37 }
 0x1ce   :  { %963 = vmatprep.subr.mxu0 %v2421_v62 }
 0x1cf   :  { %964 = vmatpush2.msra.mxu0 %v2422_v0 }
 0x1d0   :  { %965 = vmatprep.subr.mxu0 %v2423_v2 }
 0x1d1   :  { %966 = vmatpush2.msra.mxu0 %v2424_v8 }
 0x1d2   :  { %967 = vmatprep.subr.mxu0 %v2425_v10  ;;  %v906_v7 = vpop.f32.mrf.mxu1 }
 0x1d3   :  { %968 = vmatpush2.msra.mxu0 %v2426_v12 }
 0x1d4   :  { %969 = vmatprep.subr.mxu0 %v2427_v15 }
 0x1d5   :  { %970 = vmatpush2.msra.mxu0 %v2428_v19 }
 0x1d6   :  { %971 = vmatprep.subr.mxu0 %v2429_v23 }
 0x1d7   :  { %972 = vmatpush2.msra.mxu0 %v2430_v27 }
 0x1d8   :  { %973 = vmatprep.subr.mxu0 %v2431_v31 }
 0x1d9   :  { %974 = vmatpush2.msra.mxu0 %v1786_v61  ;;  %v908_v61 = vpop.f32.mrf.mxu1 }
 0x1da   :  { %976 = vmatmul.mubr.f32.vlgmr.msra.gmra.mxu0 %v1943_v4 }
 0x21a   :  { %v671_v39 = vpop.f32.mrf.mxu0 }
 0x21b   :  { %v672_v43 = vadd.f32 %v671_v39, %v592_v35 }
 0x21c   :  { %v673_v47 = vpop.f32.mrf.mxu0 }
 0x21d   :  { %v674_v51 = vadd.f32 %v673_v47, %v592_v35 }
 0x21f   :  { %v678_v55 = vcombine.low %v672_v43, %v674_v51 }
 0x221   :  { %680 = vst [vmem:[%s2029_s4] sm:$0xff] %v678_v55 }
 0x25a   :  { %v835_v63 = vpop.f32.mrf.mxu0 }
 0x25b   :  { %v836_v17 = vadd.f32 %v835_v63, %v764_v59 }
 0x25c   :  { %v837_v3 = vpop.f32.mrf.mxu0 }
 0x25d   :  { %v838_v11 = vadd.f32 %v837_v3, %v766_v30  ;;  %v907_v41 = vadd.f32 %v906_v7, %v836_v17 }
 0x25f   :  { %v909_v4 = vadd.f32 %v908_v61, %v838_v11 }
 0x29a   :  { %v977_v33 = vpop.f32.mrf.mxu0 }
 0x29b   :  { %v978_v21 = vadd.f32 %v977_v33, %v907_v41 }
 0x29c   :  { %v979_v49 = vpop.f32.mrf.mxu0 }
 0x29d   :  { %v980_v9 = vadd.f32 %v979_v49, %v909_v4 }
 0x29f   :  { %1077 = vmatprep.subr.msk.mxu1 %vm598_vm0, %v980_v9 }
 0x2a0   :  { %1078 = vmatpush1.msk.msra.mxu1 %vm598_vm0, %v978_v21 }
 0x2a1   :  { %1079 = vmatmul.mubr.msk.f32.vlgmr.msra.gmra.mxu1 %vm594_vm1, %v1932_v6 }
 0x361   :  { %v1054_v29 = vpop.f32.mrf.mxu1 }
 0x362   :  { %v1055_v53 = vadd.f32 %v1054_v29, %v592_v35 }
 0x363   :  { %v1056_v45 = vpop.f32.mrf.mxu1 }
 0x364   :  { %v1057_v1 = vadd.f32 %v1056_v45, %v592_v35 }
 0x366   :  { %v1061_v13 = vcombine.low %v1055_v53, %v1057_v1 }
 0x368   :  { %1080 = vst [vmem:[%s2029_s4 + $0x8] sm:$0xff] %v1061_v13 }
 0x369   :  { %1069 = vsyncpa [#allocation3], 1 }

</bundles_post_ra>
